<compile_context>
chip_gen: v5e
topology: v5e:2x2
jax: 0.10.0
libtpu: 0.0.40
codegen_flags: <defaults>
</compile_context>

<pallas_src>
import math
from functools import partial

import jax
import jax.numpy as jnp
from jax.experimental import pallas as pl
from jax.experimental.pallas import tpu as pltpu


# --------------------------------------------------------------------------
# Kernel 1: D = rsqrt(colsum(adj) + 1)   (the "+1" is the folded identity)
# --------------------------------------------------------------------------
def degree_rsqrt_kernel(adj_ref, d_ref, acc_ref):
    r = pl.program_id(1)  # reduction over row blocks of adj

    @pl.when(r == 0)
    def _():
        acc_ref[...] = jnp.full(acc_ref.shape, 1.0, dtype=jnp.float32)  # +I fold

    acc_ref[...] += jnp.sum(adj_ref[...].astype(jnp.float32), axis=0, keepdims=True)

    @pl.when(r == pl.num_programs(1) - 1)
    def _():
        d_ref[...] = jax.lax.rsqrt(acc_ref[...])


# --------------------------------------------------------------------------
# Kernel 2: support = x @ W + b, and supd = support * D (pre-scaled for SpMM)
# --------------------------------------------------------------------------
def linear_scale_kernel(x_ref, w_ref, b_ref, d_ref, sup_ref, supd_ref):
    sup = jnp.dot(x_ref[...], w_ref[...], preferred_element_type=jnp.float32)
    sup = sup + b_ref[...]
    sup_ref[...] = sup.astype(sup_ref.dtype)
    supd_ref[...] = (sup * d_ref[...]).astype(supd_ref.dtype)


# --------------------------------------------------------------------------
# Kernel 3: out = ((adj @ supd + supd_row) * D) * c_feat + support * c_res
#   (identity contribution folded as "+ support_row * D_row")
# --------------------------------------------------------------------------
def spmm_residual_kernel(adj_ref, supd_ref, sup_ref, d_ref, o_ref, acc_ref, *,
                         c_feat, c_res):
    k = pl.program_id(1)  # reduction over column blocks of adj

    @pl.when(k == 0)
    def _():
        acc_ref[...] = jnp.zeros_like(acc_ref)

    acc_ref[...] += jnp.dot(adj_ref[...], supd_ref[...],
                            preferred_element_type=jnp.float32)

    @pl.when(k == pl.num_programs(1) - 1)
    def _():
        sup = sup_ref[...]
        d = d_ref[...]
        feat = (acc_ref[...] + sup * d) * d            # (adj + I) @ (sup*D), * D
        o_ref[...] = (feat * c_feat + sup * c_res).astype(o_ref.dtype)


# --------------------------------------------------------------------------
# Wrapper
# --------------------------------------------------------------------------
def _round_up(v, m):
    return ((v + m - 1) // m) * m


@partial(jax.jit, static_argnames=("smooth", "tm", "tk", "adj_dtype"))
def gc_withres(x, adj, w, b, smooth, *, tm=256, tk=256, adj_dtype=jnp.float32):
    """x: (N, F_in) f32, adj: (N, N) dense nonneg, w: (F_in, F_out), b: (1, F_out).

    tm/tk: row / reduction tile sizes (raise tk to 512-1024 for large N).
    adj_dtype: set to jnp.bfloat16 on v6e/v5e to halve HBM traffic on adj.
    """
    n, f_in = x.shape
    f_out = w.shape[1]

    # Pad nodes to a tile multiple and features to a lane-dense 128 multiple.
    n_tile = math.lcm(tm, tk)
    n_pad = _round_up(n, n_tile)
    fo_pad = _round_up(f_out, 128)

    x_p = jnp.pad(x.astype(jnp.float32), ((0, n_pad - n), (0, 0)))
    adj_p = jnp.pad(adj, ((0, n_pad - n), (0, n_pad - n))).astype(adj_dtype)
    w_p = jnp.pad(w.astype(jnp.float32), ((0, 0), (0, fo_pad - f_out)))
    b_p = jnp.pad(b.astype(jnp.float32), ((0, 0), (0, fo_pad - f_out)))

    # ---- pass 1: D = rsqrt(colsum(adj) + 1) -------------------------------
    d_row = pl.pallas_call(
        degree_rsqrt_kernel,
        out_shape=jax.ShapeDtypeStruct((1, n_pad), jnp.float32),
        grid=(n_pad // tm, n_pad // tk),
        in_specs=[pl.BlockSpec((tk, tm), lambda j, r: (r, j))],
        out_specs=pl.BlockSpec((1, tm), lambda j, r: (0, j)),
        scratch_shapes=[pltpu.VMEM((1, tm), jnp.float32)],
        compiler_params=pltpu.CompilerParams(
            dimension_semantics=("parallel", "arbitrary")),
    )(adj_p)
    d_col = d_row.reshape(n_pad, 1)

    # ---- pass 2: support = x @ W + b ; supd = support * D ------------------
    support, supd = pl.pallas_call(
        linear_scale_kernel,
        out_shape=(jax.ShapeDtypeStruct((n_pad, fo_pad), jnp.float32),
                   jax.ShapeDtypeStruct((n_pad, fo_pad), adj_dtype)),
        grid=(n_pad // tm,),
        in_specs=[
            pl.BlockSpec((tm, f_in), lambda i: (i, 0)),
            pl.BlockSpec((f_in, fo_pad), lambda i: (0, 0)),
            pl.BlockSpec((1, fo_pad), lambda i: (0, 0)),
            pl.BlockSpec((tm, 1), lambda i: (i, 0)),
        ],
        out_specs=(pl.BlockSpec((tm, fo_pad), lambda i: (i, 0)),
                   pl.BlockSpec((tm, fo_pad), lambda i: (i, 0))),
        compiler_params=pltpu.CompilerParams(dimension_semantics=("parallel",)),
    )(x_p, w_p, b_p, d_col)

    # ---- pass 3: tiled SpMM + normalization + residual blend ---------------
    smooth_f = float(smooth)
    c_feat = smooth_f / (1.0 + smooth_f)
    c_res = 1.0 / (1.0 + smooth_f)

    adj_item = jnp.dtype(adj_dtype).itemsize
    cost = pl.CostEstimate(
        flops=2 * n_pad * n_pad * fo_pad,
        transcendentals=0,
        bytes_accessed=(n_pad * n_pad * adj_item            # adj
                        + n_pad * fo_pad * adj_item         # supd
                        + 2 * n_pad * fo_pad * 4            # support + out
                        + n_pad * 4),                       # d
    )

    out_full = pl.pallas_call(
        partial(spmm_residual_kernel, c_feat=c_feat, c_res=c_res),
        out_shape=jax.ShapeDtypeStruct((n_pad, fo_pad), jnp.float32),
        grid=(n_pad // tm, n_pad // tk),
        in_specs=[
            pl.BlockSpec((tm, tk), lambda i, k: (i, k)),       # adj tile
            pl.BlockSpec((tk, fo_pad), lambda i, k: (k, 0)),   # supd col-block
            pl.BlockSpec((tm, fo_pad), lambda i, k: (i, 0)),   # support row-block
            pl.BlockSpec((tm, 1), lambda i, k: (i, 0)),        # D row-block
        ],
        out_specs=pl.BlockSpec((tm, fo_pad), lambda i, k: (i, 0)),
        scratch_shapes=[pltpu.VMEM((tm, fo_pad), jnp.float32)],
        compiler_params=pltpu.CompilerParams(
            dimension_semantics=("parallel", "arbitrary")),
        cost_estimate=cost,
    )(adj_p, supd, support, d_col)

    return out_full[:n, :f_out]


# --------------------------------------------------------------------------
# Pure-JAX reference
# --------------------------------------------------------------------------
def gc_withres_ref(x, adj, w, b, smooth):
    support = x @ w + b
    a_gcn = adj + jnp.eye(adj.shape[0], dtype=adj.dtype)
    d = jnp.sum(a_gcn, axis=0)[:, None] ** -0.5
    feat = a_gcn @ (support * d) * d
    return (feat * smooth + support) / (1.0 + smooth)


if __name__ == "__main__":
    key = jax.random.PRNGKey(0)
    k_x, k_a, k_m, k_w, k_b = jax.random.split(key, 5)

    # Small but non-trivial: N=500 exercises node padding (512), grid (2, 2).
    N, F_IN, F_OUT = 500, 8, 8
    SMOOTH = 0.5

    x = jax.random.normal(k_x, (N, F_IN), dtype=jnp.float32)

    # Synthetic sparse-ish nonnegative adjacency (dense representation).
    a_vals = jax.random.uniform(k_a, (N, N), dtype=jnp.float32)
    a_mask = (jax.random.uniform(k_m, (N, N)) < 0.3).astype(jnp.float32)
    adj = a_vals * a_mask

    # nn.Linear(in_features, out_features) parameters, deterministic init.
    bound = 1.0 / (F_IN ** 0.5)
    w = jax.random.uniform(k_w, (F_IN, F_OUT), dtype=jnp.float32,
                           minval=-bound, maxval=bound)
    b = jax.random.uniform(k_b, (1, F_OUT), dtype=jnp.float32,
                           minval=-bound, maxval=bound)

    out = gc_withres(x, adj, w, b, SMOOTH, tm=256, tk=256)
    out = jax.block_until_ready(out)

    ref = gc_withres_ref(x, adj, w, b, SMOOTH)
    assert out.shape == (N, F_OUT)
    assert jnp.allclose(out, ref, atol=1e-4, rtol=1e-4), "mismatch vs reference"

    print("KERNEL_OK")
</pallas_src>

<mosaic_0001>
module attributes {stable_mosaic.version = 11 : i64} {
  func.func @degree_rsqrt_kernel(%arg0: i32, %arg1: i32, %arg2: memref<256x256xf32, #tpu.memory_space<vmem>>, %arg3: memref<1x256xf32, #tpu.memory_space<vmem>>, %arg4: memref<1x256xf32, #tpu.memory_space<vmem>>) attributes {dimension_semantics = [#tpu.dimension_semantics<parallel>, #tpu.dimension_semantics<arbitrary>], iteration_bounds = array<i64: 2, 2>, scalar_prefetch = 0 : i64, scratch_operands = 1 : i64, tpu.core_type = #tpu.core_type<tc>, window_params = [{transform_indices = @transform_0, window_bounds = array<i64: 256, 256>}, {transform_indices = @transform_1, window_bounds = array<i64: 1, 256>}]} {
    %c0_i32 = arith.constant 0 : i32
    %0 = arith.cmpi eq, %arg1, %c0_i32 : i32
    %1 = arith.extui %0 : i1 to i32
    %c0_i32_0 = arith.constant 0 : i32
    %2 = arith.cmpi ne, %1, %c0_i32_0 : i32
    scf.if %2 {
      %cst_7 = arith.constant 1.000000e+00 : f32
      %12 = vector.broadcast %cst_7 : f32 to vector<1x256xf32>
      %c0_8 = arith.constant 0 : index
      %c0_9 = arith.constant 0 : index
      %13 = vector.load %arg4[%c0_8, %c0_9] : memref<1x256xf32, #tpu.memory_space<vmem>>, vector<1x256xf32>
      tpu.vector_store %arg4[%c0_8, %c0_9], %12 {strides = array<i32>} : memref<1x256xf32, #tpu.memory_space<vmem>>, vector<1x256xf32>,
    } else {
    }
    %c0 = arith.constant 0 : index
    %c0_1 = arith.constant 0 : index
    %3 = vector.load %arg4[%c0, %c0_1] : memref<1x256xf32, #tpu.memory_space<vmem>>, vector<1x256xf32>
    %c0_2 = arith.constant 0 : index
    %c0_3 = arith.constant 0 : index
    %4 = vector.load %arg2[%c0_2, %c0_3] : memref<256x256xf32, #tpu.memory_space<vmem>>, vector<256x256xf32>
    %cst = arith.constant dense<0.000000e+00> : vector<256xf32>
    %5 = vector.multi_reduction <add>, %4, %cst [0] : vector<256x256xf32> to vector<256xf32>
    %6 = vector.shape_cast %5 : vector<256xf32> to vector<1x256xf32>
    %7 = arith.addf %3, %6 : vector<1x256xf32>
    %c0_4 = arith.constant 0 : index
    %c0_5 = arith.constant 0 : index
    %8 = vector.load %arg4[%c0_4, %c0_5] : memref<1x256xf32, #tpu.memory_space<vmem>>, vector<1x256xf32>
    tpu.vector_store %arg4[%c0_4, %c0_5], %7 {strides = array<i32>} : memref<1x256xf32, #tpu.memory_space<vmem>>, vector<1x256xf32>,
    %c1_i32 = arith.constant 1 : i32
    %9 = arith.cmpi eq, %arg1, %c1_i32 : i32
    %10 = arith.extui %9 : i1 to i32
    %c0_i32_6 = arith.constant 0 : i32
    %11 = arith.cmpi ne, %10, %c0_i32_6 : i32
    scf.if %11 {
      %c0_7 = arith.constant 0 : index
      %c0_8 = arith.constant 0 : index
      %12 = vector.load %arg4[%c0_7, %c0_8] : memref<1x256xf32, #tpu.memory_space<vmem>>, vector<1x256xf32>
      %13 = math.rsqrt %12 : vector<1x256xf32>
      %c0_9 = arith.constant 0 : index
      %c0_10 = arith.constant 0 : index
      %14 = vector.load %arg3[%c0_9, %c0_10] : memref<1x256xf32, #tpu.memory_space<vmem>>, vector<1x256xf32>
      tpu.vector_store %arg3[%c0_9, %c0_10], %13 {strides = array<i32>} : memref<1x256xf32, #tpu.memory_space<vmem>>, vector<1x256xf32>,
    } else {
    }
    return
  }
  func.func @transform_0(%arg0: i32, %arg1: i32) -> (i32, i32) {
    %c0_i32 = arith.constant 0 : i32
    return %arg1, %arg0 : i32, i32
  }
  func.func @transform_1(%arg0: i32, %arg1: i32) -> (i32, i32) {
    %c0_i32 = arith.constant 0 : i32
    %c0_i32_0 = arith.constant 0 : i32
    return %c0_i32, %arg0 : i32, i32
  }
}

module attributes {stable_mosaic.version = 11 : i64} {
  func.func @linear_scale_kernel(%arg0: i32, %arg1: memref<256x8xf32, #tpu.memory_space<vmem>>, %arg2: memref<8x128xf32, #tpu.memory_space<vmem>>, %arg3: memref<1x128xf32, #tpu.memory_space<vmem>>, %arg4: memref<256x1xf32, #tpu.memory_space<vmem>>, %arg5: memref<256x128xf32, #tpu.memory_space<vmem>>, %arg6: memref<256x128xf32, #tpu.memory_space<vmem>>) attributes {dimension_semantics = [#tpu.dimension_semantics<parallel>], iteration_bounds = array<i64: 2>, scalar_prefetch = 0 : i64, scratch_operands = 0 : i64, tpu.core_type = #tpu.core_type<tc>, window_params = [{transform_indices = @transform_0, window_bounds = array<i64: 256, 8>}, {pipeline_mode = #tpu.pipeline_mode<synchronous>, transform_indices = @transform_1, window_bounds = array<i64: 8, 128>}, {pipeline_mode = #tpu.pipeline_mode<synchronous>, transform_indices = @transform_2, window_bounds = array<i64: 1, 128>}, {transform_indices = @transform_3, window_bounds = array<i64: 256, 1>}, {transform_indices = @transform_4, window_bounds = array<i64: 256, 128>}, {transform_indices = @transform_5, window_bounds = array<i64: 256, 128>}]} {
    %c0 = arith.constant 0 : index
    %c0_0 = arith.constant 0 : index
    %0 = vector.load %arg1[%c0, %c0_0] : memref<256x8xf32, #tpu.memory_space<vmem>>, vector<256x8xf32>
    %c0_1 = arith.constant 0 : index
    %c0_2 = arith.constant 0 : index
    %1 = vector.load %arg2[%c0_1, %c0_2] : memref<8x128xf32, #tpu.memory_space<vmem>>, vector<8x128xf32>
    %cst = arith.constant dense<0.000000e+00> : vector<256x128xf32>
    %2 = tpu.matmul %0, %1, %cst {dimension_numbers = #tpu.dot_dimension_numbers<[1], [0], [0], [1], [0, 0, 1, 1], [], []>} : vector<256x8xf32>, vector<8x128xf32>, vector<256x128xf32> -> vector<256x128xf32>
    %c0_3 = arith.constant 0 : index
    %c0_4 = arith.constant 0 : index
    %3 = vector.load %arg3[%c0_3, %c0_4] : memref<1x128xf32, #tpu.memory_space<vmem>>, vector<1x128xf32>
    %4 = vector.broadcast %3 : vector<1x128xf32> to vector<256x128xf32>
    %5 = arith.addf %2, %4 : vector<256x128xf32>
    %c0_5 = arith.constant 0 : index
    %c0_6 = arith.constant 0 : index
    %6 = vector.load %arg5[%c0_5, %c0_6] : memref<256x128xf32, #tpu.memory_space<vmem>>, vector<256x128xf32>
    tpu.vector_store %arg5[%c0_5, %c0_6], %5 {strides = array<i32>} : memref<256x128xf32, #tpu.memory_space<vmem>>, vector<256x128xf32>,
    %c0_7 = arith.constant 0 : index
    %c0_8 = arith.constant 0 : index
    %7 = vector.load %arg4[%c0_7, %c0_8] : memref<256x1xf32, #tpu.memory_space<vmem>>, vector<256x1xf32>
    %8 = vector.broadcast %7 : vector<256x1xf32> to vector<256x128xf32>
    %9 = arith.mulf %5, %8 : vector<256x128xf32>
    %c0_9 = arith.constant 0 : index
    %c0_10 = arith.constant 0 : index
    %10 = vector.load %arg6[%c0_9, %c0_10] : memref<256x128xf32, #tpu.memory_space<vmem>>, vector<256x128xf32>
    tpu.vector_store %arg6[%c0_9, %c0_10], %9 {strides = array<i32>} : memref<256x128xf32, #tpu.memory_space<vmem>>, vector<256x128xf32>,
    return
  }
  func.func @transform_0(%arg0: i32) -> (i32, i32) {
    %c0_i32 = arith.constant 0 : i32
    %c0_i32_0 = arith.constant 0 : i32
    return %arg0, %c0_i32 : i32, i32
  }
  func.func @transform_1(%arg0: i32) -> (i32, i32) {
    %c0_i32 = arith.constant 0 : i32
    %c0_i32_0 = arith.constant 0 : i32
    %c0_i32_1 = arith.constant 0 : i32
    return %c0_i32, %c0_i32_0 : i32, i32
  }
  func.func @transform_2(%arg0: i32) -> (i32, i32) {
    %c0_i32 = arith.constant 0 : i32
    %c0_i32_0 = arith.constant 0 : i32
    %c0_i32_1 = arith.constant 0 : i32
    return %c0_i32, %c0_i32_0 : i32, i32
  }
  func.func @transform_3(%arg0: i32) -> (i32, i32) {
    %c0_i32 = arith.constant 0 : i32
    %c0_i32_0 = arith.constant 0 : i32
    return %arg0, %c0_i32 : i32, i32
  }
  func.func @transform_4(%arg0: i32) -> (i32, i32) {
    %c0_i32 = arith.constant 0 : i32
    %c0_i32_0 = arith.constant 0 : i32
    return %arg0, %c0_i32 : i32, i32
  }
  func.func @transform_5(%arg0: i32) -> (i32, i32) {
    %c0_i32 = arith.constant 0 : i32
    %c0_i32_0 = arith.constant 0 : i32
    return %arg0, %c0_i32 : i32, i32
  }
}

module attributes {stable_mosaic.version = 11 : i64} {
  func.func @spmm_residual_kernel(%arg0: i32, %arg1: i32, %arg2: memref<256x256xf32, #tpu.memory_space<vmem>>, %arg3: memref<256x128xf32, #tpu.memory_space<vmem>>, %arg4: memref<256x128xf32, #tpu.memory_space<vmem>>, %arg5: memref<256x1xf32, #tpu.memory_space<vmem>>, %arg6: memref<256x128xf32, #tpu.memory_space<vmem>>, %arg7: memref<256x128xf32, #tpu.memory_space<vmem>>) attributes {dimension_semantics = [#tpu.dimension_semantics<parallel>, #tpu.dimension_semantics<arbitrary>], iteration_bounds = array<i64: 2, 2>, scalar_prefetch = 0 : i64, scratch_operands = 1 : i64, tpu.core_type = #tpu.core_type<tc>, window_params = [{transform_indices = @transform_0, window_bounds = array<i64: 256, 256>}, {transform_indices = @transform_1, window_bounds = array<i64: 256, 128>}, {transform_indices = @transform_2, window_bounds = array<i64: 256, 128>}, {transform_indices = @transform_3, window_bounds = array<i64: 256, 1>}, {transform_indices = @transform_4, window_bounds = array<i64: 256, 128>}]} {
    %c0_i32 = arith.constant 0 : i32
    %0 = arith.cmpi eq, %arg1, %c0_i32 : i32
    %1 = arith.extui %0 : i1 to i32
    %c0_i32_0 = arith.constant 0 : i32
    %2 = arith.cmpi ne, %1, %c0_i32_0 : i32
    scf.if %2 {
      %cst_9 = arith.constant 0.000000e+00 : f32
      %12 = vector.broadcast %cst_9 : f32 to vector<256x128xf32>
      %c0_10 = arith.constant 0 : index
      %c0_11 = arith.constant 0 : index
      %13 = vector.load %arg7[%c0_10, %c0_11] : memref<256x128xf32, #tpu.memory_space<vmem>>, vector<256x128xf32>
      tpu.vector_store %arg7[%c0_10, %c0_11], %12 {strides = array<i32>} : memref<256x128xf32, #tpu.memory_space<vmem>>, vector<256x128xf32>,
    } else {
    }
    %c0 = arith.constant 0 : index
    %c0_1 = arith.constant 0 : index
    %3 = vector.load %arg7[%c0, %c0_1] : memref<256x128xf32, #tpu.memory_space<vmem>>, vector<256x128xf32>
    %c0_2 = arith.constant 0 : index
    %c0_3 = arith.constant 0 : index
    %4 = vector.load %arg2[%c0_2, %c0_3] : memref<256x256xf32, #tpu.memory_space<vmem>>, vector<256x256xf32>
    %c0_4 = arith.constant 0 : index
    %c0_5 = arith.constant 0 : index
    %5 = vector.load %arg3[%c0_4, %c0_5] : memref<256x128xf32, #tpu.memory_space<vmem>>, vector<256x128xf32>
    %cst = arith.constant dense<0.000000e+00> : vector<256x128xf32>
    %6 = tpu.matmul %4, %5, %cst {dimension_numbers = #tpu.dot_dimension_numbers<[1], [0], [0], [1], [0, 0, 1, 1], [], []>} : vector<256x256xf32>, vector<256x128xf32>, vector<256x128xf32> -> vector<256x128xf32>
    %7 = arith.addf %3, %6 : vector<256x128xf32>
    %c0_6 = arith.constant 0 : index
    %c0_7 = arith.constant 0 : index
    %8 = vector.load %arg7[%c0_6, %c0_7] : memref<256x128xf32, #tpu.memory_space<vmem>>, vector<256x128xf32>
    tpu.vector_store %arg7[%c0_6, %c0_7], %7 {strides = array<i32>} : memref<256x128xf32, #tpu.memory_space<vmem>>, vector<256x128xf32>,
    %c1_i32 = arith.constant 1 : i32
    %9 = arith.cmpi eq, %arg1, %c1_i32 : i32
    %10 = arith.extui %9 : i1 to i32
    %c0_i32_8 = arith.constant 0 : i32
    %11 = arith.cmpi ne, %10, %c0_i32_8 : i32
    scf.if %11 {
      %c0_9 = arith.constant 0 : index
      %c0_10 = arith.constant 0 : index
      %12 = vector.load %arg4[%c0_9, %c0_10] : memref<256x128xf32, #tpu.memory_space<vmem>>, vector<256x128xf32>
      %c0_11 = arith.constant 0 : index
      %c0_12 = arith.constant 0 : index
      %13 = vector.load %arg5[%c0_11, %c0_12] : memref<256x1xf32, #tpu.memory_space<vmem>>, vector<256x1xf32>
      %c0_13 = arith.constant 0 : index
      %c0_14 = arith.constant 0 : index
      %14 = vector.load %arg7[%c0_13, %c0_14] : memref<256x128xf32, #tpu.memory_space<vmem>>, vector<256x128xf32>
      %15 = vector.broadcast %13 : vector<256x1xf32> to vector<256x128xf32>
      %16 = arith.mulf %12, %15 : vector<256x128xf32>
      %17 = arith.addf %14, %16 : vector<256x128xf32>
      %18 = vector.broadcast %13 : vector<256x1xf32> to vector<256x128xf32>
      %19 = arith.mulf %17, %18 : vector<256x128xf32>
      %cst_15 = arith.constant 0.333333343 : f32
      %20 = vector.broadcast %cst_15 : f32 to vector<256x128xf32>
      %21 = arith.mulf %19, %20 : vector<256x128xf32>
      %cst_16 = arith.constant 0.666666686 : f32
      %22 = vector.broadcast %cst_16 : f32 to vector<256x128xf32>
      %23 = arith.mulf %12, %22 : vector<256x128xf32>
      %24 = arith.addf %21, %23 : vector<256x128xf32>
      %c0_17 = arith.constant 0 : index
      %c0_18 = arith.constant 0 : index
      %25 = vector.load %arg6[%c0_17, %c0_18] : memref<256x128xf32, #tpu.memory_space<vmem>>, vector<256x128xf32>
      tpu.vector_store %arg6[%c0_17, %c0_18], %24 {strides = array<i32>} : memref<256x128xf32, #tpu.memory_space<vmem>>, vector<256x128xf32>,
    } else {
    }
    return
  }
  func.func @transform_0(%arg0: i32, %arg1: i32) -> (i32, i32) {
    %c0_i32 = arith.constant 0 : i32
    return %arg0, %arg1 : i32, i32
  }
  func.func @transform_1(%arg0: i32, %arg1: i32) -> (i32, i32) {
    %c0_i32 = arith.constant 0 : i32
    %c0_i32_0 = arith.constant 0 : i32
    return %arg1, %c0_i32 : i32, i32
  }
  func.func @transform_2(%arg0: i32, %arg1: i32) -> (i32, i32) {
    %c0_i32 = arith.constant 0 : i32
    %c0_i32_0 = arith.constant 0 : i32
    return %arg0, %c0_i32 : i32, i32
  }
  func.func @transform_3(%arg0: i32, %arg1: i32) -> (i32, i32) {
    %c0_i32 = arith.constant 0 : i32
    %c0_i32_0 = arith.constant 0 : i32
    return %arg0, %c0_i32 : i32, i32
  }
  func.func @transform_4(%arg0: i32, %arg1: i32) -> (i32, i32) {
    %c0_i32 = arith.constant 0 : i32
    %c0_i32_0 = arith.constant 0 : i32
    return %arg0, %c0_i32 : i32, i32
  }
}

</mosaic_0001>

<bundles_post_ra>
// kernel: gc_withres.3
= control target key start
LH: loop header
LB: loop body
LE: loop exit
PB: predicated region body
PF: predicated region fallthrough
CT: control target
= control target key end

     0   :  { %s671_s6 = smov 0   ;;  %s673_s7 = smov 0   ;;  %s975_s0 = inlined_call_operand.vmem [shape: f32[512,512], index: 0, kind: input, shape index: {}]   ;;  %s976_s1 = inlined_call_operand.vmem [shape: f32[1,512], index: 1, kind: output, shape index: {}]  }
   0x1   :  { %s675_s8 = smov 0   ;;  %s677_s9 = smov 0  }
   0x2   :  { %s679_s10 = smov 0   ;;  %s681_s11 = smov 0  }
   0x3   :  { %s683_s12 = smov 0  }
   0x4 LB: > { %s20_s13 = sadd.s32 1, %s650_s10  ;;  %s23_s14 = sadd.s32 1, %s654_s11  ;;  %s658_s12 = sphi %s683_s12, %s11_s12   ;;  %s654_s11 = sphi %s681_s11, %s984_s11   ;;  %s650_s10 = sphi %s679_s10, %s983_s10   ;;  %s646_s9 = sphi %s677_s9, %s982_s9   ;;  %s642_s8 = sphi %s675_s8, %s981_s8   ;;  %s638_s7 = sphi %s673_s7, %s980_s7   ;;  %s634_s6 = sphi %s671_s6, %s979_s6  }
   0x5   : > { %p21_p0 = scmp.ge.s32.totalorder %s20_s13, 2  ;;  %p39_p1 = scmp.ne.s32.totalorder %s638_s7, %s634_s6 }
   0x6   : > { %p40_p2 = scmp.eq.s32.totalorder %s658_s12, 0  ;;  %s32_s18 = sadd.s32 1, %s638_s7 }
   0x7   : > { %s986_s13 = smov (%p21_p0, %s20_s13), 0  ;;  %s988_s14 = smov (!%p21_p0, %s23_s14), %s654_s11 }
   0x8   : > { %p41_p3 = por %p40_p2, %p39_p1  ;;  %p25_p4 = scmp.ge.s32.totalorder %s988_s14, 2 }
   0x9   : > { %s27_s15 = ssub.s32 %s650_s10, %s986_s13  ;;  %p531_p6 = scmp.ge.s32.totalorder %s658_s12, 4 }
   0xa   : > { %s990_s14 = smov (%p25_p4, %s988_s14), 0 }
   0xb   : > { %s28_s16 = ssub.s32 %s654_s11, %s990_s14  ;;  %91 = sbr.rel (%p531_p6) target bundleno = 87 (0x57), region = 16 }
   0xc   : > { %s29_s17 = sor.u32 %s28_s16, %s27_s15 }
   0xd   : > { %p30_p5 = scmp.eq.s32.totalorder %s29_s17, 0 }
   0xf   : > { %s722_s19 = scalar_select %p30_p5, %s638_s7, %s32_s18  }
  0x10   : > { %94 = sbr.rel (!%p41_p3) target bundleno = 87 (0x57), region = 20  ;;  %s96_s20 = sand.u32 (%p41_p3), 1, %s638_s7  }
  0x11   : > { %s534_s21 = sshll.u32 (%p41_p3), %s654_s11, 1  ;;  %s532_s22 = sshll.u32 (%p41_p3), %s96_s20, 9 }
  0x12   : > { %s544_s23 = sshll.u32 (%p41_p3), %s650_s10, 7  ;;  %s736_s29 = scalar_lea.vmem (%p41_p3), [#allocation3], %s532_s22 }
  0x13   : > { %s102_s24 = sadd.s32 (%p41_p3), %s544_s23, %s534_s21 }
  0x14   : > { %s536_s25 = sshll.u32 (%p41_p3), %s102_s24, 3 }
  0x15   : > { %s731_s28 = scalar_lea.vmem %s975_s0, %s536_s25 }
  0x16   : > { %v117_v0 = vld [vmem:[%s731_s28] sm:$0xff]  ;;  %v119_v1 = vld [vmem:[%s731_s28 + $0x8] sm:$0xff] }
  0x17   : > { %v121_v2 = vld [vmem:[%s731_s28 + $0x20] sm:$0xff]  ;;  %118 = vst [vmem:[%s736_s29] sm:$0xff] %v117_v0  ;;  %v123_v3 = vld [vmem:[%s731_s28 + $0x28] sm:$0xff] }
  0x18   : > { %120 = vst [vmem:[%s736_s29 + $0x8] sm:$0xff] %v119_v1  ;;  %v125_v4 = vld [vmem:[%s731_s28 + $0x40] sm:$0xff]  ;;  %v127_v5 = vld [vmem:[%s731_s28 + $0x48] sm:$0xff] }
  0x19   : > { %122 = vst [vmem:[%s736_s29 + $0x10] sm:$0xff] %v121_v2  ;;  %v129_v6 = vld [vmem:[%s731_s28 + $0x60] sm:$0xff]  ;;  %v131_v7 = vld [vmem:[%s731_s28 + $0x68] sm:$0xff] }
  0x1a   : > { %124 = vst [vmem:[%s736_s29 + $0x18] sm:$0xff] %v123_v3  ;;  %v133_v8 = vld [vmem:[%s731_s28 + $0x80] sm:$0xff]  ;;  %v135_v9 = vld [vmem:[%s731_s28 + $0x88] sm:$0xff] }
  0x1b   : > { %126 = vst [vmem:[%s736_s29 + $0x20] sm:$0xff] %v125_v4  ;;  %v137_v10 = vld [vmem:[%s731_s28 + $0xa0] sm:$0xff]  ;;  %v139_v11 = vld [vmem:[%s731_s28 + $0xa8] sm:$0xff] }
  0x1c   : > { %128 = vst [vmem:[%s736_s29 + $0x28] sm:$0xff] %v127_v5  ;;  %v141_v12 = vld [vmem:[%s731_s28 + $0xc0] sm:$0xff]  ;;  %v143_v13 = vld [vmem:[%s731_s28 + $0xc8] sm:$0xff] }
  0x1d   : > { %130 = vst [vmem:[%s736_s29 + $0x30] sm:$0xff] %v129_v6  ;;  %v145_v14 = vld [vmem:[%s731_s28 + $0xe0] sm:$0xff]  ;;  %v147_v15 = vld [vmem:[%s731_s28 + $0xe8] sm:$0xff] }
  0x1e   : > { %132 = vst [vmem:[%s736_s29 + $0x38] sm:$0xff] %v131_v7  ;;  %v149_v16 = vld [vmem:[%s731_s28 + $0x100] sm:$0xff]  ;;  %v151_v17 = vld [vmem:[%s731_s28 + $0x108] sm:$0xff] }
  0x1f   : > { %134 = vst [vmem:[%s736_s29 + $0x40] sm:$0xff] %v133_v8  ;;  %v153_v18 = vld [vmem:[%s731_s28 + $0x120] sm:$0xff]  ;;  %v155_v19 = vld [vmem:[%s731_s28 + $0x128] sm:$0xff] }
  0x20   : > { %136 = vst [vmem:[%s736_s29 + $0x48] sm:$0xff] %v135_v9  ;;  %v157_v20 = vld [vmem:[%s731_s28 + $0x140] sm:$0xff]  ;;  %v159_v21 = vld [vmem:[%s731_s28 + $0x148] sm:$0xff] }
  0x21   : > { %138 = vst [vmem:[%s736_s29 + $0x50] sm:$0xff] %v137_v10  ;;  %v161_v22 = vld [vmem:[%s731_s28 + $0x160] sm:$0xff]  ;;  %v163_v23 = vld [vmem:[%s731_s28 + $0x168] sm:$0xff] }
  0x22   : > { %140 = vst [vmem:[%s736_s29 + $0x58] sm:$0xff] %v139_v11  ;;  %v165_v24 = vld [vmem:[%s731_s28 + $0x180] sm:$0xff]  ;;  %v167_v25 = vld [vmem:[%s731_s28 + $0x188] sm:$0xff] }
  0x23   : > { %142 = vst [vmem:[%s736_s29 + $0x60] sm:$0xff] %v141_v12  ;;  %v169_v26 = vld [vmem:[%s731_s28 + $0x1a0] sm:$0xff]  ;;  %v171_v27 = vld [vmem:[%s731_s28 + $0x1a8] sm:$0xff] }
  0x24   : > { %144 = vst [vmem:[%s736_s29 + $0x68] sm:$0xff] %v143_v13  ;;  %v173_v28 = vld [vmem:[%s731_s28 + $0x1c0] sm:$0xff]  ;;  %v175_v29 = vld [vmem:[%s731_s28 + $0x1c8] sm:$0xff] }
  0x25   : > { %146 = vst [vmem:[%s736_s29 + $0x70] sm:$0xff] %v145_v14  ;;  %v177_v30 = vld [vmem:[%s731_s28 + $0x1e0] sm:$0xff]  ;;  %v179_v31 = vld [vmem:[%s731_s28 + $0x1e8] sm:$0xff] }
  0x26   : > { %148 = vst [vmem:[%s736_s29 + $0x78] sm:$0xff] %v147_v15  ;;  %v181_v32 = vld [vmem:[%s731_s28 + $0x200] sm:$0xff]  ;;  %v183_v33 = vld [vmem:[%s731_s28 + $0x208] sm:$0xff] }
  0x27   : > { %150 = vst [vmem:[%s736_s29 + $0x80] sm:$0xff] %v149_v16  ;;  %v185_v34 = vld [vmem:[%s731_s28 + $0x220] sm:$0xff]  ;;  %v187_v35 = vld [vmem:[%s731_s28 + $0x228] sm:$0xff] }
  0x28   : > { %152 = vst [vmem:[%s736_s29 + $0x88] sm:$0xff] %v151_v17  ;;  %v189_v36 = vld [vmem:[%s731_s28 + $0x240] sm:$0xff]  ;;  %v191_v37 = vld [vmem:[%s731_s28 + $0x248] sm:$0xff] }
  0x29   : > { %154 = vst [vmem:[%s736_s29 + $0x90] sm:$0xff] %v153_v18  ;;  %v193_v38 = vld [vmem:[%s731_s28 + $0x260] sm:$0xff]  ;;  %v195_v39 = vld [vmem:[%s731_s28 + $0x268] sm:$0xff] }
  0x2a   : > { %156 = vst [vmem:[%s736_s29 + $0x98] sm:$0xff] %v155_v19  ;;  %v197_v40 = vld [vmem:[%s731_s28 + $0x280] sm:$0xff]  ;;  %v199_v41 = vld [vmem:[%s731_s28 + $0x288] sm:$0xff] }
  0x2b   : > { %158 = vst [vmem:[%s736_s29 + $0xa0] sm:$0xff] %v157_v20  ;;  %v201_v42 = vld [vmem:[%s731_s28 + $0x2a0] sm:$0xff]  ;;  %v203_v43 = vld [vmem:[%s731_s28 + $0x2a8] sm:$0xff] }
  0x2c   : > { %160 = vst [vmem:[%s736_s29 + $0xa8] sm:$0xff] %v159_v21  ;;  %v205_v44 = vld [vmem:[%s731_s28 + $0x2c0] sm:$0xff]  ;;  %v207_v45 = vld [vmem:[%s731_s28 + $0x2c8] sm:$0xff] }
  0x2d   : > { %162 = vst [vmem:[%s736_s29 + $0xb0] sm:$0xff] %v161_v22  ;;  %v209_v46 = vld [vmem:[%s731_s28 + $0x2e0] sm:$0xff]  ;;  %v211_v47 = vld [vmem:[%s731_s28 + $0x2e8] sm:$0xff] }
  0x2e   : > { %164 = vst [vmem:[%s736_s29 + $0xb8] sm:$0xff] %v163_v23  ;;  %v213_v48 = vld [vmem:[%s731_s28 + $0x300] sm:$0xff]  ;;  %v215_v49 = vld [vmem:[%s731_s28 + $0x308] sm:$0xff] }
  0x2f   : > { %166 = vst [vmem:[%s736_s29 + $0xc0] sm:$0xff] %v165_v24  ;;  %v217_v50 = vld [vmem:[%s731_s28 + $0x320] sm:$0xff]  ;;  %v219_v51 = vld [vmem:[%s731_s28 + $0x328] sm:$0xff] }
  0x30   : > { %168 = vst [vmem:[%s736_s29 + $0xc8] sm:$0xff] %v167_v25  ;;  %v221_v52 = vld [vmem:[%s731_s28 + $0x340] sm:$0xff]  ;;  %v223_v53 = vld [vmem:[%s731_s28 + $0x348] sm:$0xff] }
  0x31   : > { %170 = vst [vmem:[%s736_s29 + $0xd0] sm:$0xff] %v169_v26  ;;  %v225_v54 = vld [vmem:[%s731_s28 + $0x360] sm:$0xff]  ;;  %v227_v55 = vld [vmem:[%s731_s28 + $0x368] sm:$0xff] }
  0x32   : > { %172 = vst [vmem:[%s736_s29 + $0xd8] sm:$0xff] %v171_v27  ;;  %v229_v56 = vld [vmem:[%s731_s28 + $0x380] sm:$0xff]  ;;  %v231_v57 = vld [vmem:[%s731_s28 + $0x388] sm:$0xff] }
  0x33   : > { %174 = vst [vmem:[%s736_s29 + $0xe0] sm:$0xff] %v173_v28  ;;  %v233_v58 = vld [vmem:[%s731_s28 + $0x3a0] sm:$0xff]  ;;  %v235_v59 = vld [vmem:[%s731_s28 + $0x3a8] sm:$0xff] }
  0x34   : > { %176 = vst [vmem:[%s736_s29 + $0xe8] sm:$0xff] %v175_v29  ;;  %v237_v60 = vld [vmem:[%s731_s28 + $0x3c0] sm:$0xff]  ;;  %v239_v61 = vld [vmem:[%s731_s28 + $0x3c8] sm:$0xff] }
  0x35   : > { %178 = vst [vmem:[%s736_s29 + $0xf0] sm:$0xff] %v177_v30  ;;  %v241_v62 = vld [vmem:[%s731_s28 + $0x3e0] sm:$0xff]  ;;  %v243_v63 = vld [vmem:[%s731_s28 + $0x3e8] sm:$0xff] }
  0x36   : > { %180 = vst [vmem:[%s736_s29 + $0xf8] sm:$0xff] %v179_v31 }
  0x37   : > { %182 = vst [vmem:[%s736_s29 + $0x100] sm:$0xff] %v181_v32 }
  0x38   : > { %184 = vst [vmem:[%s736_s29 + $0x108] sm:$0xff] %v183_v33 }
  0x39   : > { %186 = vst [vmem:[%s736_s29 + $0x110] sm:$0xff] %v185_v34 }
  0x3a   : > { %188 = vst [vmem:[%s736_s29 + $0x118] sm:$0xff] %v187_v35 }
  0x3b   : > { %190 = vst [vmem:[%s736_s29 + $0x120] sm:$0xff] %v189_v36 }
  0x3c   : > { %192 = vst [vmem:[%s736_s29 + $0x128] sm:$0xff] %v191_v37 }
  0x3d   : > { %194 = vst [vmem:[%s736_s29 + $0x130] sm:$0xff] %v193_v38 }
  0x3e   : > { %196 = vst [vmem:[%s736_s29 + $0x138] sm:$0xff] %v195_v39 }
  0x3f   : > { %198 = vst [vmem:[%s736_s29 + $0x140] sm:$0xff] %v197_v40 }
  0x40   : > { %200 = vst [vmem:[%s736_s29 + $0x148] sm:$0xff] %v199_v41 }
  0x41   : > { %202 = vst [vmem:[%s736_s29 + $0x150] sm:$0xff] %v201_v42 }
  0x42   : > { %204 = vst [vmem:[%s736_s29 + $0x158] sm:$0xff] %v203_v43 }
  0x43   : > { %206 = vst [vmem:[%s736_s29 + $0x160] sm:$0xff] %v205_v44 }
  0x44   : > { %208 = vst [vmem:[%s736_s29 + $0x168] sm:$0xff] %v207_v45 }
  0x45   : > { %210 = vst [vmem:[%s736_s29 + $0x170] sm:$0xff] %v209_v46 }
  0x46   : > { %212 = vst [vmem:[%s736_s29 + $0x178] sm:$0xff] %v211_v47 }
  0x47   : > { %214 = vst [vmem:[%s736_s29 + $0x180] sm:$0xff] %v213_v48 }
  0x48   : > { %216 = vst [vmem:[%s736_s29 + $0x188] sm:$0xff] %v215_v49 }
  0x49   : > { %218 = vst [vmem:[%s736_s29 + $0x190] sm:$0xff] %v217_v50 }
  0x4a   : > { %220 = vst [vmem:[%s736_s29 + $0x198] sm:$0xff] %v219_v51 }
  0x4b   : > { %222 = vst [vmem:[%s736_s29 + $0x1a0] sm:$0xff] %v221_v52 }
  0x4c   : > { %224 = vst [vmem:[%s736_s29 + $0x1a8] sm:$0xff] %v223_v53 }
  0x4d   : > { %226 = vst [vmem:[%s736_s29 + $0x1b0] sm:$0xff] %v225_v54 }
  0x4e   : > { %228 = vst [vmem:[%s736_s29 + $0x1b8] sm:$0xff] %v227_v55 }
  0x4f   : > { %230 = vst [vmem:[%s736_s29 + $0x1c0] sm:$0xff] %v229_v56 }
  0x50   : > { %232 = vst [vmem:[%s736_s29 + $0x1c8] sm:$0xff] %v231_v57 }
  0x51   : > { %234 = vst [vmem:[%s736_s29 + $0x1d0] sm:$0xff] %v233_v58 }
  0x52   : > { %236 = vst [vmem:[%s736_s29 + $0x1d8] sm:$0xff] %v235_v59 }
  0x53   : > { %238 = vst [vmem:[%s736_s29 + $0x1e0] sm:$0xff] %v237_v60 }
  0x54   : > { %240 = vst [vmem:[%s736_s29 + $0x1e8] sm:$0xff] %v239_v61 }
  0x55   : > { %242 = vst [vmem:[%s736_s29 + $0x1f0] sm:$0xff] %v241_v62 }
  0x56   : > { %244 = vst [vmem:[%s736_s29 + $0x1f8] sm:$0xff] %v243_v63 }
  0x57 PF: > { %p537_p7 = scmp.ge.s32.totalorder %s658_s12, 1  ;;  %p249_p8 = scmp.lt.s32.totalorder %s658_s12, 5 }
  0x59   : > { %p250_p9 = pnand %p537_p7, %p249_p8 }
  0x5a   : > { %s256_s30 = sand.u32 (!%p250_p9), 1, %s634_s6   ;;  %s539_s2 = sshll.u32 (!%p250_p9), %s646_s9, 1 }
  0x5b   : > { %253 = sbr.rel (%p250_p9) target bundleno = 213 (0xd5), region = 43  ;;  %s538_s3 = sshll.u32 (!%p250_p9), %s256_s30, 9 }
  0x5c   : > { %p277_p10 = scmp.lt.s32.totalorder (!%p250_p9), %s539_s2, 3  ;;  %s873_s16 = scalar_lea.vmem (!%p250_p9), [#allocation3], %s538_s3 }
  0x5d   : > { %p540_p11 = scmp.ne.s32.totalorder (!%p250_p9), %s642_s8, 0 }
  0x60   : > { %s992_s2 = smov (!%p277_p10, %s539_s2), 3  ;;  %284 = sbr.rel (%p540_p11) target bundleno = 105 (0x69), region = 51 }
  0x61   : > { %s279_s15 = scalar_lea.vmem %s976_s1, %s992_s2 }
  0x65   : > { %v285_v0 = vlaneseq  ;;  %v660_v1 = vmov 1.0  }
  0x67   : > { %vm287_vm0 = vcmp.lt.s32.totalorder %v285_v0, 256 }
  0x68   : > { %289 = vst.msk [vmem:[#allocation2] sm:$0x3] %vm287_vm0, %v660_v1 }
  0x69 PF: > { %v291_v2 = vld [vmem:[%s873_s16] sm:$0xff]  ;;  %v292_v3 = vld [vmem:[%s873_s16 + $0x8] sm:$0xff]  ;;  %v293_v4 = vld [vmem:[%s873_s16 + $0x10] sm:$0xff]  ;;  %vm432_vm1 = vcmask 1040384   ;;  %p541_p12 = scmp.ne.s32.totalorder %s642_s8, 1 }
  0x6a   : > { %v294_v5 = vld [vmem:[%s873_s16 + $0x18] sm:$0xff]  ;;  %v295_v6 = vld [vmem:[%s873_s16 + $0x20] sm:$0xff]  ;;  %v296_v7 = vld [vmem:[%s873_s16 + $0x28] sm:$0xff]  ;;  %v355_v8 = vadd.f32 %v293_v4, %v291_v2 }
  0x6b   : > { %v392_v9 = vadd.f32 %v294_v5, %v292_v3  ;;  %v297_v10 = vld [vmem:[%s873_s16 + $0x30] sm:$0xff]  ;;  %v298_v11 = vld [vmem:[%s873_s16 + $0x38] sm:$0xff]  ;;  %v299_v14 = vld [vmem:[%s873_s16 + $0x40] sm:$0xff] }
  0x6c   : > { %v356_v12 = vadd.f32 %v355_v8, %v295_v6  ;;  %v300_v15 = vld [vmem:[%s873_s16 + $0x48] sm:$0xff]  ;;  %v301_v18 = vld [vmem:[%s873_s16 + $0x50] sm:$0xff]  ;;  %v302_v19 = vld [vmem:[%s873_s16 + $0x58] sm:$0xff] }
  0x6d   : > { %v393_v13 = vadd.f32 %v392_v9, %v296_v7  ;;  %v303_v22 = vld [vmem:[%s873_s16 + $0x60] sm:$0xff]  ;;  %v304_v23 = vld [vmem:[%s873_s16 + $0x68] sm:$0xff]  ;;  %v305_v26 = vld [vmem:[%s873_s16 + $0x70] sm:$0xff] }
  0x6e   : > { %v357_v16 = vadd.f32 %v356_v12, %v297_v10  ;;  %v306_v27 = vld [vmem:[%s873_s16 + $0x78] sm:$0xff]  ;;  %v307_v30 = vld [vmem:[%s873_s16 + $0x80] sm:$0xff]  ;;  %v308_v31 = vld [vmem:[%s873_s16 + $0x88] sm:$0xff] }
  0x6f   : > { %v394_v17 = vadd.f32 %v393_v13, %v298_v11  ;;  %v309_v34 = vld [vmem:[%s873_s16 + $0x90] sm:$0xff]  ;;  %v310_v35 = vld [vmem:[%s873_s16 + $0x98] sm:$0xff]  ;;  %v311_v38 = vld [vmem:[%s873_s16 + $0xa0] sm:$0xff] }
  0x70   : > { %v358_v20 = vadd.f32 %v357_v16, %v299_v14  ;;  %v312_v39 = vld [vmem:[%s873_s16 + $0xa8] sm:$0xff]  ;;  %v313_v42 = vld [vmem:[%s873_s16 + $0xb0] sm:$0xff]  ;;  %v314_v43 = vld [vmem:[%s873_s16 + $0xb8] sm:$0xff] }
  0x71   : > { %v395_v21 = vadd.f32 %v394_v17, %v300_v15  ;;  %v315_v46 = vld [vmem:[%s873_s16 + $0xc0] sm:$0xff]  ;;  %v316_v47 = vld [vmem:[%s873_s16 + $0xc8] sm:$0xff]  ;;  %v317_v50 = vld [vmem:[%s873_s16 + $0xd0] sm:$0xff] }
  0x72   : > { %v359_v24 = vadd.f32 %v358_v20, %v301_v18  ;;  %v318_v51 = vld [vmem:[%s873_s16 + $0xd8] sm:$0xff]  ;;  %v319_v54 = vld [vmem:[%s873_s16 + $0xe0] sm:$0xff]  ;;  %v320_v55 = vld [vmem:[%s873_s16 + $0xe8] sm:$0xff] }
  0x73   : > { %v396_v25 = vadd.f32 %v395_v21, %v302_v19  ;;  %v321_v58 = vld [vmem:[%s873_s16 + $0xf0] sm:$0xff]  ;;  %v322_v59 = vld [vmem:[%s873_s16 + $0xf8] sm:$0xff]  ;;  %v323_v62 = vld [vmem:[%s873_s16 + $0x100] sm:$0xff] }
  0x74   : > { %v360_v28 = vadd.f32 %v359_v24, %v303_v22  ;;  %v324_v63 = vld [vmem:[%s873_s16 + $0x108] sm:$0xff]  ;;  %v325_v2 = vld [vmem:[%s873_s16 + $0x110] sm:$0xff]  ;;  %v326_v3 = vld [vmem:[%s873_s16 + $0x118] sm:$0xff] }
  0x75   : > { %v397_v29 = vadd.f32 %v396_v25, %v304_v23  ;;  %v327_v6 = vld [vmem:[%s873_s16 + $0x120] sm:$0xff]  ;;  %v328_v7 = vld [vmem:[%s873_s16 + $0x128] sm:$0xff]  ;;  %v329_v10 = vld [vmem:[%s873_s16 + $0x130] sm:$0xff] }
  0x76   : > { %v361_v32 = vadd.f32 %v360_v28, %v305_v26  ;;  %v330_v11 = vld [vmem:[%s873_s16 + $0x138] sm:$0xff]  ;;  %v331_v14 = vld [vmem:[%s873_s16 + $0x140] sm:$0xff]  ;;  %v332_v15 = vld [vmem:[%s873_s16 + $0x148] sm:$0xff] }
  0x77   : > { %v398_v33 = vadd.f32 %v397_v29, %v306_v27  ;;  %v333_v18 = vld [vmem:[%s873_s16 + $0x150] sm:$0xff]  ;;  %v334_v19 = vld [vmem:[%s873_s16 + $0x158] sm:$0xff]  ;;  %v335_v22 = vld [vmem:[%s873_s16 + $0x160] sm:$0xff] }
  0x78   : > { %v362_v36 = vadd.f32 %v361_v32, %v307_v30  ;;  %v336_v23 = vld [vmem:[%s873_s16 + $0x168] sm:$0xff]  ;;  %v337_v26 = vld [vmem:[%s873_s16 + $0x170] sm:$0xff]  ;;  %v338_v27 = vld [vmem:[%s873_s16 + $0x178] sm:$0xff] }
  0x79   : > { %v399_v37 = vadd.f32 %v398_v33, %v308_v31  ;;  %v339_v30 = vld [vmem:[%s873_s16 + $0x180] sm:$0xff]  ;;  %v340_v31 = vld [vmem:[%s873_s16 + $0x188] sm:$0xff] }
  0x7a   : > { %v363_v40 = vadd.f32 %v362_v36, %v309_v34  ;;  %v341_v34 = vld [vmem:[%s873_s16 + $0x190] sm:$0xff] }
  0x7b   : > { %v400_v41 = vadd.f32 %v399_v37, %v310_v35  ;;  %v342_v35 = vld [vmem:[%s873_s16 + $0x198] sm:$0xff] }
  0x7c   : > { %v364_v44 = vadd.f32 %v363_v40, %v311_v38  ;;  %v343_v38 = vld [vmem:[%s873_s16 + $0x1a0] sm:$0xff] }
  0x7d   : > { %v401_v45 = vadd.f32 %v400_v41, %v312_v39  ;;  %v344_v39 = vld [vmem:[%s873_s16 + $0x1a8] sm:$0xff] }
  0x7e   : > { %v365_v48 = vadd.f32 %v364_v44, %v313_v42  ;;  %v345_v42 = vld [vmem:[%s873_s16 + $0x1b0] sm:$0xff] }
  0x7f   : > { %v402_v49 = vadd.f32 %v401_v45, %v314_v43  ;;  %v346_v43 = vld [vmem:[%s873_s16 + $0x1b8] sm:$0xff] }
  0x80   : > { %v366_v52 = vadd.f32 %v365_v48, %v315_v46  ;;  %v347_v46 = vld [vmem:[%s873_s16 + $0x1c0] sm:$0xff] }
  0x81   : > { %v403_v53 = vadd.f32 %v402_v49, %v316_v47  ;;  %v348_v47 = vld [vmem:[%s873_s16 + $0x1c8] sm:$0xff] }
  0x82   : > { %v367_v56 = vadd.f32 %v366_v52, %v317_v50  ;;  %v349_v50 = vld [vmem:[%s873_s16 + $0x1d0] sm:$0xff] }
  0x83   : > { %v404_v57 = vadd.f32 %v403_v53, %v318_v51  ;;  %v350_v51 = vld [vmem:[%s873_s16 + $0x1d8] sm:$0xff] }
  0x84   : > { %v368_v60 = vadd.f32 %v367_v56, %v319_v54  ;;  %v351_v54 = vld [vmem:[%s873_s16 + $0x1e0] sm:$0xff] }
  0x85   : > { %v405_v61 = vadd.f32 %v404_v57, %v320_v55  ;;  %v352_v55 = vld [vmem:[%s873_s16 + $0x1e8] sm:$0xff] }
  0x86   : > { %v369_v0 = vadd.f32 %v368_v60, %v321_v58  ;;  %v353_v58 = vld [vmem:[%s873_s16 + $0x1f0] sm:$0xff] }
  0x87   : > { %v406_v1 = vadd.f32 %v405_v61, %v322_v59  ;;  %v354_v59 = vld [vmem:[%s873_s16 + $0x1f8] sm:$0xff] }
  0x88   : > { %v370_v4 = vadd.f32 %v369_v0, %v323_v62 }
  0x89   : > { %v407_v5 = vadd.f32 %v406_v1, %v324_v63 }
  0x8a   : > { %v371_v8 = vadd.f32 %v370_v4, %v325_v2 }
  0x8b   : > { %v408_v9 = vadd.f32 %v407_v5, %v326_v3 }
  0x8c   : > { %v372_v12 = vadd.f32 %v371_v8, %v327_v6 }
  0x8d   : > { %v409_v13 = vadd.f32 %v408_v9, %v328_v7 }
  0x8e   : > { %v373_v16 = vadd.f32 %v372_v12, %v329_v10  ;;  %v436_v12 = vlaneseq }
  0x8f   : > { %v410_v17 = vadd.f32 %v409_v13, %v330_v11  ;;  %v290_v13 = vld [vmem:[#allocation2] sm:$0x3] }
  0x90   : > { %v374_v20 = vadd.f32 %v373_v16, %v331_v14  ;;  %vm940_vm2 = vcmp.lt.s32.totalorder %v436_v12, 256 }
  0x91   : > { %v411_v21 = vadd.f32 %v410_v17, %v332_v15 }
  0x92   : > { %v375_v24 = vadd.f32 %v374_v20, %v333_v18 }
  0x93   : > { %v412_v25 = vadd.f32 %v411_v21, %v334_v19 }
  0x94   : > { %v376_v28 = vadd.f32 %v375_v24, %v335_v22 }
  0x95   : > { %v413_v29 = vadd.f32 %v412_v25, %v336_v23 }
  0x96   : > { %v377_v32 = vadd.f32 %v376_v28, %v337_v26 }
  0x97   : > { %v414_v33 = vadd.f32 %v413_v29, %v338_v27 }
  0x98   : > { %v378_v36 = vadd.f32 %v377_v32, %v339_v30 }
  0x99   : > { %v415_v37 = vadd.f32 %v414_v33, %v340_v31 }
  0x9a   : > { %v379_v40 = vadd.f32 %v378_v36, %v341_v34 }
  0x9b   : > { %v416_v41 = vadd.f32 %v415_v37, %v342_v35 }
  0x9c   : > { %v380_v44 = vadd.f32 %v379_v40, %v343_v38 }
  0x9d   : > { %v417_v45 = vadd.f32 %v416_v41, %v344_v39 }
  0x9e   : > { %v381_v48 = vadd.f32 %v380_v44, %v345_v42 }
  0x9f   : > { %v418_v49 = vadd.f32 %v417_v45, %v346_v43 }
  0xa0   : > { %v382_v52 = vadd.f32 %v381_v48, %v347_v46 }
  0xa1   : > { %v419_v53 = vadd.f32 %v418_v49, %v348_v47 }
  0xa2   : > { %v383_v56 = vadd.f32 %v382_v52, %v349_v50 }
  0xa3   : > { %v420_v57 = vadd.f32 %v419_v53, %v350_v51 }
  0xa4   : > { %v384_v60 = vadd.f32 %v383_v56, %v351_v54 }
  0xa5   : > { %v421_v61 = vadd.f32 %v420_v57, %v352_v55 }
  0xa6   : > { %v385_v62 = vadd.f32 %v384_v60, %v353_v58 }
  0xa7   : > { %v422_v63 = vadd.f32 %v421_v61, %v354_v59 }
  0xa8   : > { %v386_v0 = vrot.slane %v385_v62, 4 }
  0xa9   : > { %v423_v1 = vrot.slane %v422_v63, 4 }
  0xaa   : > { %v387_v2 = vadd.f32 %v386_v0, %v385_v62 }
  0xab   : > { %v424_v3 = vadd.f32 %v423_v1, %v422_v63 }
  0xac   : > { %v388_v4 = vrot.slane %v387_v2, 2 }
  0xad   : > { %v425_v5 = vrot.slane %v424_v3, 2 }
  0xae   : > { %v389_v6 = vadd.f32 %v388_v4, %v387_v2 }
  0xaf   : > { %v426_v7 = vadd.f32 %v425_v5, %v424_v3 }
  0xb0   : > { %v390_v8 = vrot.slane %v389_v6, 1 }
  0xb1   : > { %v427_v9 = vrot.slane %v426_v7, 1 }
  0xb2   : > { %v391_v10 = vadd.f32 %v390_v8, %v389_v6 }
  0xb3   : > { %v428_v11 = vadd.f32 %v427_v9, %v426_v7 }
  0xb5   : > { %v431_v14 = vrot.slane %v428_v11, 7 }
  0xb6   : > { %444 = sbr.rel (%p541_p12) target bundleno = 213 (0xd5), region = 55 }
  0xb7   : > { %v433_v15 = vsel %vm432_vm1, %v391_v10, %v431_v14 }
  0xb8   : > { %v435_v17 = vadd.f32 %v433_v15, %v290_v13 }
  0xba   : > { %440 = vst.msk [vmem:[#allocation2] sm:$0x3] %vm940_vm2, %v435_v17 }
  0xc1   : > { %v445_v18 = vld [vmem:[#allocation2] sm:$0x3] }
  0xc2   : > { %602 = vrsqrt.f32 %v445_v18  ;;  %vm452_vm3 = vweird.f32 %v445_v18 }
  0xc8   : > { %v603_v19 = vpop.eup %602 }
  0xc9   : > { %v447_v20 = vmul.f32 %v603_v19, %v445_v18  ;;  %vm453_vm4 = vweird.f32 %v603_v19 }
  0xca   : > { %vm454_vm5 = vmor %vm452_vm3, %vm453_vm4 }
  0xcb   : > { %v448_v21 = vmul.f32 %v603_v19, %v447_v20 }
  0xcd   : > { %v449_v22 = vmul.f32 0.5, %v448_v21 }
  0xcf   : > { %v450_v23 = vsub.f32 1.5, %v449_v22 }
  0xd1   : > { %v451_v24 = vmul.f32 %v603_v19, %v450_v23 }
  0xd3   : > { %v455_v25 = vsel %vm454_vm5, %v603_v19, %v451_v24 }
  0xd4   : > { %456 = vst.msk [vmem:[%s279_s15] sm:$0x3] %vm940_vm2, %v455_v25 }
  0xd5 PF: > { %s11_s12 = sadd.s32 1, %s658_s12   ;;  %s979_s6 = smov %s638_s7 }
  0xd6   : > { %p8_p13 = scmp.ge.s32.totalorder %s11_s12, 6   ;;  %s980_s7 = smov %s722_s19 }
  0xd7   : > { %s981_s8 = smov %s650_s10  ;;  %s982_s9 = smov %s654_s11 }
  0xd8   : > { %s983_s10 = smov %s986_s13  ;;  %s984_s11 = smov %s990_s14 }
  0xd9   :  { %10 = sbr.rel (!%p8_p13) target bundleno = 4 (0x4), region = 90 }

// kernel: gc_withres.4
= control target key start
LH: loop header
LB: loop body
LE: loop exit
PB: predicated region body
PF: predicated region fallthrough
CT: control target
= control target key end

     0   :  { %s1003_s18 = smov 0   ;;  %s1285_s0 = inlined_call_operand.vmem [shape: f32[512,8], index: 0, kind: input, shape index: {}]   ;;  %s1286_s1 = inlined_call_operand.vmem [shape: f32[8,128], index: 1, kind: input, shape index: {}]   ;;  %s1287_s2 = inlined_call_operand.vmem [shape: f32[1,128], index: 2, kind: input, shape index: {}]   ;;  %s1288_s3 = inlined_call_operand.vmem [shape: f32[512,1], index: 3, kind: input, shape index: {}]   ;;  %s1289_s4 = inlined_call_operand.vmem [shape: f32[512,128], index: 4, kind: output, shape index: {0}]   ;;  %s1290_s5 = inlined_call_operand.vmem [shape: f32[512,128], index: 5, kind: output, shape index: {1}]  }
   0x1 LB: > { %s901_s19 = sadd.s32 4294967295, %s970_s18   ;;  %p905_p0 = scmp.ge.s32.totalorder %s970_s18, 1  ;;  %s970_s18 = sphi %s1003_s18, %s16_s18  }
   0x2   : > { %p202_p1 = scmp.lt.s32.totalorder %s970_s18, 3 }
   0x4   : > { %p203_p2 = pnand %p905_p0, %p202_p1 }
   0x5   : > { %s906_s22 = sshll.u32 (!%p203_p2), %s901_s19, 5 }
   0x6   : > { %206 = sbr.rel (%p203_p2) target bundleno = 217 (0xd9), region = 36  ;;  %p241_p3 = scmp.lt.s32.totalorder (!%p203_p2), %s906_s22, 63 }
   0xb   : > { %v296_v0 = vld [vmem:[%s1286_s1] sm:$0xff]  ;;  %v972_v1 = vmov 0   ;;  %s1292_s22 = smov (!%p241_p3, %s906_s22), 63  ;;  %vm301_vm0 = vcmask 64512  }
   0xc   : > { %962 = vset.pattern.permute.xlu2 %v972_v1  ;;  %961 = vset.pattern.permute.xlu1 %v972_v1  ;;  %s1014_s23 = sshll.u32 %s1292_s22, 3 }
   0xd   : > { %960 = vset.pattern.permute.xlu0 %v972_v1  ;;  %413 = vmatpush.msra.mxu0 %v296_v0  ;;  %s1020_s26 = scalar_lea.vmem %s1288_s3, %s1014_s23  ;;  %s1026_s29 = scalar_lea.vmem %s1285_s0, %s1014_s23 }
   0xe   : > { %948 = vmatpush.msra.mxu1 %v296_v0  ;;  %949 = vmatpush.msra.mxu2 %v296_v0  ;;  %v547_v2 = vld [vmem:[%s1020_s26 + $0x20] sm:$0xff]  ;;  %v545_v3 = vld [vmem:[%s1020_s26 + $0x10] sm:$0xff]  ;;  %v548_v9 = vld [vmem:[%s1020_s26 + $0x28] sm:$0xff]  ;;  %s1143_s9 = scalar_lea.vmem %s1289_s4, %s1014_s23  ;;  %s1150_s12 = scalar_lea.vmem %s1290_s5, %s1014_s23 }
   0xf   : > { %950 = vmatpush.msra.mxu3 %v296_v0  ;;  %v543_v4 = vld [vmem:[%s1020_s26] sm:$0xff]  ;;  %597 = vperm.xlu2 %962, %v547_v2   ;;  %v546_v10 = vld [vmem:[%s1020_s26 + $0x18] sm:$0xff]  ;;  %v544_v11 = vld [vmem:[%s1020_s26 + $0x8] sm:$0xff] }
  0x10   : > { %587 = vperm.xlu1 %961, %v545_v3   ;;  %v264_v5 = vld [vmem:[%s1026_s29] sm:$0xff]  ;;  %577 = vperm.xlu0 %960, %v543_v4   ;;  %v265_v12 = vld [vmem:[%s1026_s29 + $0x8] sm:$0xff]  ;;  %v550_v17 = vld [vmem:[%s1020_s26 + $0x38] sm:$0xff] }
  0x11   : > { %v272_v6 = vld [vmem:[%s1026_s29 + $0x40] sm:$0xff]  ;;  %914 = vmatmul.msk.f32.vlgmr.msra.gmra.mxu0 %vm301_vm0, %v264_v5  ;;  %v273_v13 = vld [vmem:[%s1026_s29 + $0x48] sm:$0xff]  ;;  %v549_v18 = vld [vmem:[%s1020_s26 + $0x30] sm:$0xff] }
  0x12   : > { %v280_v7 = vld [vmem:[%s1026_s29 + $0x80] sm:$0xff]  ;;  %922 = vmatmul.msk.f32.vlgmr.msra.gmra.mxu1 %vm301_vm0, %v272_v6  ;;  %v281_v14 = vld [vmem:[%s1026_s29 + $0x88] sm:$0xff]  ;;  %v266_v19 = vld [vmem:[%s1026_s29 + $0x10] sm:$0xff] }
  0x13   : > { %v288_v8 = vld [vmem:[%s1026_s29 + $0xc0] sm:$0xff]  ;;  %930 = vmatmul.msk.f32.vlgmr.msra.gmra.mxu2 %vm301_vm0, %v280_v7  ;;  %v289_v15 = vld [vmem:[%s1026_s29 + $0xc8] sm:$0xff]  ;;  %v274_v20 = vld [vmem:[%s1026_s29 + $0x50] sm:$0xff] }
  0x14   : > { %938 = vmatmul.msk.f32.vlgmr.msra.gmra.mxu3 %vm301_vm0, %v288_v8  ;;  %v551_v16 = vld [vmem:[%s1020_s26 + $0x40] sm:$0xff]  ;;  %v282_v21 = vld [vmem:[%s1026_s29 + $0x90] sm:$0xff]  ;;  %v554_v23 = vld [vmem:[%s1020_s26 + $0x58] sm:$0xff] }
  0x15   : > { %v290_v22 = vld [vmem:[%s1026_s29 + $0xd0] sm:$0xff]  ;;  %v552_v25 = vld [vmem:[%s1020_s26 + $0x48] sm:$0xff]  ;;  %v267_v26 = vld [vmem:[%s1026_s29 + $0x18] sm:$0xff] }
  0x16   : > { %v553_v24 = vld [vmem:[%s1020_s26 + $0x50] sm:$0xff]  ;;  %v275_v27 = vld [vmem:[%s1026_s29 + $0x58] sm:$0xff]  ;;  %v556_v31 = vld [vmem:[%s1020_s26 + $0x68] sm:$0xff] }
  0x17   : > { %602 = vperm.xlu2 %962, %v548_v9   ;;  %v283_v28 = vld [vmem:[%s1026_s29 + $0x98] sm:$0xff]  ;;  %v557_v30 = vld [vmem:[%s1020_s26 + $0x70] sm:$0xff]  ;;  %v555_v32 = vld [vmem:[%s1020_s26 + $0x60] sm:$0xff] }
  0x18   : > { %592 = vperm.xlu1 %961, %v546_v10   ;;  %582 = vperm.xlu0 %960, %v544_v11   ;;  %v291_v29 = vld [vmem:[%s1026_s29 + $0xd8] sm:$0xff]  ;;  %v268_v33 = vld [vmem:[%s1026_s29 + $0x20] sm:$0xff]  ;;  %v560_v37 = vld [vmem:[%s1020_s26 + $0x88] sm:$0xff] }
  0x19   : > { %915 = vmatmul.msk.f32.gmra.mxu0 %vm301_vm0, %v265_v12  ;;  %v276_v34 = vld [vmem:[%s1026_s29 + $0x60] sm:$0xff]  ;;  %v558_v39 = vld [vmem:[%s1020_s26 + $0x78] sm:$0xff]  ;;  %v269_v40 = vld [vmem:[%s1026_s29 + $0x28] sm:$0xff] }
  0x1a   : > { %923 = vmatmul.msk.f32.gmra.mxu1 %vm301_vm0, %v273_v13  ;;  %v284_v35 = vld [vmem:[%s1026_s29 + $0xa0] sm:$0xff]  ;;  %v277_v41 = vld [vmem:[%s1026_s29 + $0x68] sm:$0xff]  ;;  %v562_v45 = vld [vmem:[%s1020_s26 + $0x98] sm:$0xff] }
  0x1b   : > { %931 = vmatmul.msk.f32.gmra.mxu2 %vm301_vm0, %v281_v14  ;;  %v292_v36 = vld [vmem:[%s1026_s29 + $0xe0] sm:$0xff]  ;;  %v285_v42 = vld [vmem:[%s1026_s29 + $0xa8] sm:$0xff]  ;;  %v561_v46 = vld [vmem:[%s1020_s26 + $0x90] sm:$0xff] }
  0x1c   : > { %939 = vmatmul.msk.f32.gmra.mxu3 %vm301_vm0, %v289_v15  ;;  %v559_v38 = vld [vmem:[%s1020_s26 + $0x80] sm:$0xff]  ;;  %v293_v43 = vld [vmem:[%s1026_s29 + $0xe8] sm:$0xff]  ;;  %v270_v47 = vld [vmem:[%s1026_s29 + $0x30] sm:$0xff] }
  0x1d   : > { %v563_v44 = vld [vmem:[%s1020_s26 + $0xa0] sm:$0xff]  ;;  %v278_v48 = vld [vmem:[%s1026_s29 + $0x70] sm:$0xff]  ;;  %v566_v51 = vld [vmem:[%s1020_s26 + $0xb8] sm:$0xff] }
  0x1e   : > { %v286_v49 = vld [vmem:[%s1026_s29 + $0xb0] sm:$0xff]  ;;  %v564_v53 = vld [vmem:[%s1020_s26 + $0xa8] sm:$0xff]  ;;  %v271_v54 = vld [vmem:[%s1026_s29 + $0x38] sm:$0xff] }
  0x1f   : > { %617 = vperm.xlu2 %962, %v551_v16   ;;  %v294_v50 = vld [vmem:[%s1026_s29 + $0xf0] sm:$0xff]  ;;  %v279_v55 = vld [vmem:[%s1026_s29 + $0x78] sm:$0xff]  ;;  %v568_v59 = vld [vmem:[%s1020_s26 + $0xc8] sm:$0xff] }
  0x20   : > { %612 = vperm.xlu1 %961, %v550_v17   ;;  %607 = vperm.xlu0 %960, %v549_v18   ;;  %v565_v52 = vld [vmem:[%s1020_s26 + $0xb0] sm:$0xff]  ;;  %v287_v56 = vld [vmem:[%s1026_s29 + $0xb8] sm:$0xff]  ;;  %v567_v60 = vld [vmem:[%s1020_s26 + $0xc0] sm:$0xff] }
  0x21   : > { %916 = vmatmul.msk.f32.gmra.mxu0 %vm301_vm0, %v266_v19  ;;  %v295_v57 = vld [vmem:[%s1026_s29 + $0xf8] sm:$0xff]  ;;  %v569_v58 = vld [vmem:[%s1020_s26 + $0xd0] sm:$0xff]  ;;  %v572_v61 = vld [vmem:[%s1020_s26 + $0xe8] sm:$0xff] }
  0x22   : > { %924 = vmatmul.msk.f32.gmra.mxu1 %vm301_vm0, %v274_v20  ;;  %v571_v62 = vld [vmem:[%s1020_s26 + $0xe0] sm:$0xff]  ;;  %v570_v63 = vld [vmem:[%s1020_s26 + $0xd8] sm:$0xff]  ;;  %v573_v1 = vld [vmem:[%s1020_s26 + $0xf0] sm:$0xff] }
  0x23   : > { %932 = vmatmul.msk.f32.gmra.mxu2 %vm301_vm0, %v282_v21  ;;  %v574_v0 = vld [vmem:[%s1020_s26 + $0xf8] sm:$0xff]  ;;  %v1137_v11 = vld [vmem:[%s1287_s2] ss:$0 sm:$0xff] }
  0x24   : > { %940 = vmatmul.msk.f32.gmra.mxu3 %vm301_vm0, %v290_v22 }
  0x27   : > { %632 = vperm.xlu2 %962, %v554_v23  }
  0x28   : > { %627 = vperm.xlu1 %961, %v553_v24   ;;  %622 = vperm.xlu0 %960, %v552_v25  }
  0x29   : > { %917 = vmatmul.msk.f32.gmra.mxu0 %vm301_vm0, %v267_v26 }
  0x2a   : > { %925 = vmatmul.msk.f32.gmra.mxu1 %vm301_vm0, %v275_v27 }
  0x2b   : > { %933 = vmatmul.msk.f32.gmra.mxu2 %vm301_vm0, %v283_v28 }
  0x2c   : > { %941 = vmatmul.msk.f32.gmra.mxu3 %vm301_vm0, %v291_v29 }
  0x2f   : > { %647 = vperm.xlu2 %962, %v557_v30  }
  0x30   : > { %642 = vperm.xlu1 %961, %v556_v31   ;;  %637 = vperm.xlu0 %960, %v555_v32  }
  0x31   : > { %918 = vmatmul.msk.f32.gmra.mxu0 %vm301_vm0, %v268_v33 }
  0x32   : > { %926 = vmatmul.msk.f32.gmra.mxu1 %vm301_vm0, %v276_v34 }
  0x33   : > { %934 = vmatmul.msk.f32.gmra.mxu2 %vm301_vm0, %v284_v35 }
  0x34   : > { %942 = vmatmul.msk.f32.gmra.mxu3 %vm301_vm0, %v292_v36 }
  0x37   : > { %662 = vperm.xlu2 %962, %v560_v37  }
  0x38   : > { %657 = vperm.xlu1 %961, %v559_v38   ;;  %652 = vperm.xlu0 %960, %v558_v39  }
  0x39   : > { %919 = vmatmul.msk.f32.gmra.mxu0 %vm301_vm0, %v269_v40 }
  0x3a   : > { %927 = vmatmul.msk.f32.gmra.mxu1 %vm301_vm0, %v277_v41 }
  0x3b   : > { %935 = vmatmul.msk.f32.gmra.mxu2 %vm301_vm0, %v285_v42 }
  0x3c   : > { %943 = vmatmul.msk.f32.gmra.mxu3 %vm301_vm0, %v293_v43 }
  0x3f   : > { %677 = vperm.xlu2 %962, %v563_v44  }
  0x40   : > { %672 = vperm.xlu1 %961, %v562_v45   ;;  %667 = vperm.xlu0 %960, %v561_v46  }
  0x41   : > { %920 = vmatmul.msk.f32.gmra.mxu0 %vm301_vm0, %v270_v47 }
  0x42   : > { %928 = vmatmul.msk.f32.gmra.mxu1 %vm301_vm0, %v278_v48 }
  0x43   : > { %936 = vmatmul.msk.f32.gmra.mxu2 %vm301_vm0, %v286_v49 }
  0x44   : > { %944 = vmatmul.msk.f32.gmra.mxu3 %vm301_vm0, %v294_v50 }
  0x47   : > { %692 = vperm.xlu2 %962, %v566_v51  }
  0x48   : > { %687 = vperm.xlu1 %961, %v565_v52   ;;  %682 = vperm.xlu0 %960, %v564_v53  }
  0x49   : > { %921 = vmatmul.msk.f32.gmra.mxu0 %vm301_vm0, %v271_v54 }
  0x4a   : > { %929 = vmatmul.msk.f32.gmra.mxu1 %vm301_vm0, %v279_v55 }
  0x4b   : > { %937 = vmatmul.msk.f32.gmra.mxu2 %vm301_vm0, %v287_v56 }
  0x4c   : > { %945 = vmatmul.msk.f32.gmra.mxu3 %vm301_vm0, %v295_v57 }
  0x4f   : > { %707 = vperm.xlu2 %962, %v569_v58  }
  0x50   : > { %702 = vperm.xlu1 %961, %v568_v59   ;;  %697 = vperm.xlu0 %960, %v567_v60  }
  0x57   : > { %722 = vperm.xlu2 %962, %v572_v61  }
  0x58   : > { %717 = vperm.xlu1 %961, %v571_v62   ;;  %712 = vperm.xlu0 %960, %v570_v63  }
  0x60   : > { %732 = vperm.xlu1 %961, %v574_v0   ;;  %727 = vperm.xlu0 %960, %v573_v1  }
  0x69   : > { %v1124_v2 = vpop.permute.xlu2 %597 }
  0x71   : > { %v1126_v3 = vpop.permute.xlu2 %602 }
  0x79   : > { %v618_v4 = vpop.permute.xlu2 %617 }
  0x81   : > { %v1128_v5 = vpop.permute.xlu2 %632 }
  0x82   : > { %v588_v6 = vpop.permute.xlu1 %587  ;;  %v578_v7 = vpop.permute.xlu0 %577 }
  0x89   : > { %v1130_v8 = vpop.permute.xlu2 %647 }
  0x8a   : > { %v1132_v9 = vpop.permute.xlu1 %592  ;;  %v583_v10 = vpop.permute.xlu0 %582 }
  0x8e   : > { %v415_v12 = vpop.f32.mrf.mxu0 }
  0x8f   : > { %v416_v13 = vadd.f32 %v1137_v11, %v415_v12  ;;  %v439_v14 = vpop.f32.mrf.mxu1 }
  0x90   : > { %v440_v15 = vadd.f32 %v1137_v11, %v439_v14 }
  0x91   : > { %511 = vst [vmem:[%s1143_s9] sm:$0xff] %v416_v13  ;;  %v735_v16 = vmul.f32 %v578_v7, %v416_v13  ;;  %v663_v18 = vpop.permute.xlu2 %662 }
  0x92   : > { %519 = vst [vmem:[%s1143_s9 + $0x40] sm:$0xff] %v440_v15  ;;  %v743_v17 = vmul.f32 %v618_v4, %v440_v15  ;;  %v1155_v19 = vpop.permute.xlu1 %612  ;;  %v1158_v20 = vpop.permute.xlu0 %607 }
  0x93   : > { %767 = vst [vmem:[%s1150_s12] sm:$0xff] %v735_v16 }
  0x94   : > { %775 = vst [vmem:[%s1150_s12 + $0x40] sm:$0xff] %v743_v17 }
  0x96   : > { %v463_v21 = vpop.f32.mrf.mxu2  ;;  %v418_v24 = vpop.f32.mrf.mxu0 }
  0x97   : > { %v464_v22 = vadd.f32 %v1137_v11, %v463_v21  ;;  %v487_v23 = vpop.f32.mrf.mxu3  ;;  %v419_v26 = vadd.f32 %v1137_v11, %v418_v24  ;;  %v442_v27 = vpop.f32.mrf.mxu1 }
  0x98   : > { %v1163_v25 = vadd.f32 %v1137_v11, %v487_v23  ;;  %v443_v28 = vadd.f32 %v1137_v11, %v442_v27 }
  0x99   : > { %527 = vst [vmem:[%s1143_s9 + $0x80] sm:$0xff] %v464_v22  ;;  %v736_v29 = vmul.f32 %v583_v10, %v419_v26  ;;  %v1171_v30 = vpop.permute.xlu2 %677 }
  0x9a   : > { %535 = vst [vmem:[%s1143_s9 + $0xc0] sm:$0xff] %v1163_v25  ;;  %v628_v31 = vpop.permute.xlu1 %627  ;;  %v623_v32 = vpop.permute.xlu0 %622 }
  0x9b   : > { %512 = vst [vmem:[%s1143_s9 + $0x8] sm:$0xff] %v419_v26  ;;  %v744_v33 = vmul.f32 %v623_v32, %v443_v28 }
  0x9c   : > { %768 = vst [vmem:[%s1150_s12 + $0x8] sm:$0xff] %v736_v29 }
  0x9d   : > { %520 = vst [vmem:[%s1143_s9 + $0x48] sm:$0xff] %v443_v28 }
  0x9e   : > { %v466_v34 = vpop.f32.mrf.mxu2  ;;  %776 = vst [vmem:[%s1150_s12 + $0x48] sm:$0xff] %v744_v33  ;;  %v421_v37 = vpop.f32.mrf.mxu0 }
  0x9f   : > { %v467_v35 = vadd.f32 %v1137_v11, %v466_v34  ;;  %v490_v36 = vpop.f32.mrf.mxu3  ;;  %v422_v39 = vadd.f32 %v1137_v11, %v421_v37  ;;  %v445_v40 = vpop.f32.mrf.mxu1 }
  0xa0   : > { %v1178_v38 = vadd.f32 %v1137_v11, %v490_v36  ;;  %v446_v42 = vadd.f32 %v1137_v11, %v445_v40 }
  0xa1   : > { %528 = vst [vmem:[%s1143_s9 + $0x88] sm:$0xff] %v467_v35  ;;  %v752_v41 = vmul.f32 %v663_v18, %v467_v35  ;;  %v737_v43 = vmul.f32 %v588_v6, %v422_v39  ;;  %v1186_v45 = vpop.permute.xlu2 %692 }
  0xa2   : > { %536 = vst [vmem:[%s1143_s9 + $0xc8] sm:$0xff] %v1178_v38  ;;  %v745_v44 = vmul.f32 %v628_v31, %v446_v42  ;;  %v1188_v46 = vpop.permute.xlu1 %642  ;;  %v638_v47 = vpop.permute.xlu0 %637 }
  0xa3   : > { %784 = vst [vmem:[%s1150_s12 + $0x88] sm:$0xff] %v752_v41 }
  0xa4   : > { %513 = vst [vmem:[%s1143_s9 + $0x10] sm:$0xff] %v422_v39 }
  0xa5   : > { %769 = vst [vmem:[%s1150_s12 + $0x10] sm:$0xff] %v737_v43 }
  0xa6   : > { %521 = vst [vmem:[%s1143_s9 + $0x50] sm:$0xff] %v446_v42  ;;  %v469_v48 = vpop.f32.mrf.mxu2  ;;  %v424_v51 = vpop.f32.mrf.mxu0 }
  0xa7   : > { %777 = vst [vmem:[%s1150_s12 + $0x50] sm:$0xff] %v745_v44  ;;  %v470_v49 = vadd.f32 %v1137_v11, %v469_v48  ;;  %v493_v50 = vpop.f32.mrf.mxu3  ;;  %v425_v53 = vadd.f32 %v1137_v11, %v424_v51  ;;  %v448_v54 = vpop.f32.mrf.mxu1 }
  0xa8   : > { %v494_v52 = vadd.f32 %v1137_v11, %v493_v50  ;;  %v449_v55 = vadd.f32 %v1137_v11, %v448_v54 }
  0xa9   : > { %529 = vst [vmem:[%s1143_s9 + $0x90] sm:$0xff] %v470_v49  ;;  %v738_v56 = vmul.f32 %v1132_v9, %v425_v53  ;;  %v708_v58 = vpop.permute.xlu2 %707 }
  0xaa   : > { %537 = vst [vmem:[%s1143_s9 + $0xd0] sm:$0xff] %v494_v52  ;;  %v746_v57 = vmul.f32 %v1128_v5, %v449_v55  ;;  %v658_v59 = vpop.permute.xlu1 %657  ;;  %v761_v60 = vmul.f32 %v708_v58, %v494_v52  ;;  %v1204_v62 = vpop.permute.xlu0 %652 }
  0xab   : > { %514 = vst [vmem:[%s1143_s9 + $0x18] sm:$0xff] %v425_v53  ;;  %v751_v61 = vmul.f32 %v658_v59, %v464_v22 }
  0xac   : > { %770 = vst [vmem:[%s1150_s12 + $0x18] sm:$0xff] %v738_v56 }
  0xad   : > { %522 = vst [vmem:[%s1143_s9 + $0x58] sm:$0xff] %v449_v55 }
  0xae   : > { %778 = vst [vmem:[%s1150_s12 + $0x58] sm:$0xff] %v746_v57  ;;  %v472_v63 = vpop.f32.mrf.mxu2  ;;  %v427_v4 = vpop.f32.mrf.mxu0 }
  0xaf   : > { %793 = vst [vmem:[%s1150_s12 + $0xd0] sm:$0xff] %v761_v60  ;;  %v473_v0 = vadd.f32 %v1137_v11, %v472_v63  ;;  %v496_v1 = vpop.f32.mrf.mxu3  ;;  %v428_v6 = vadd.f32 %v1137_v11, %v427_v4  ;;  %v451_v7 = vpop.f32.mrf.mxu1 }
  0xb0   : > { %783 = vst [vmem:[%s1150_s12 + $0x80] sm:$0xff] %v751_v61  ;;  %v1212_v5 = vadd.f32 %v1137_v11, %v496_v1  ;;  %v452_v9 = vadd.f32 %v1137_v11, %v451_v7 }
  0xb1   : > { %530 = vst [vmem:[%s1143_s9 + $0x98] sm:$0xff] %v473_v0  ;;  %v739_v10 = vmul.f32 %v1124_v2, %v428_v6  ;;  %v723_v39 = vpop.permute.xlu2 %722 }
  0xb2   : > { %538 = vst [vmem:[%s1143_s9 + $0xd8] sm:$0xff] %v1212_v5  ;;  %v747_v12 = vmul.f32 %v638_v47, %v452_v9  ;;  %v673_v13 = vpop.permute.xlu1 %672  ;;  %v668_v15 = vpop.permute.xlu0 %667 }
  0xb3   : > { %515 = vst [vmem:[%s1143_s9 + $0x20] sm:$0xff] %v428_v6  ;;  %v754_v14 = vmul.f32 %v673_v13, %v473_v0  ;;  %v753_v16 = vmul.f32 %v668_v15, %v470_v49 }
  0xb4   : > { %771 = vst [vmem:[%s1150_s12 + $0x20] sm:$0xff] %v739_v10 }
  0xb5   : > { %523 = vst [vmem:[%s1143_s9 + $0x60] sm:$0xff] %v452_v9 }
  0xb6   : > { %779 = vst [vmem:[%s1150_s12 + $0x60] sm:$0xff] %v747_v12  ;;  %v475_v17 = vpop.f32.mrf.mxu2  ;;  %v430_v2 = vpop.f32.mrf.mxu0 }
  0xb7   : > { %786 = vst [vmem:[%s1150_s12 + $0x98] sm:$0xff] %v754_v14  ;;  %v476_v18 = vadd.f32 %v1137_v11, %v475_v17  ;;  %v499_v21 = vpop.f32.mrf.mxu3  ;;  %v431_v23 = vadd.f32 %v1137_v11, %v430_v2  ;;  %v454_v24 = vpop.f32.mrf.mxu1 }
  0xb8   : > { %785 = vst [vmem:[%s1150_s12 + $0x90] sm:$0xff] %v753_v16  ;;  %v500_v22 = vadd.f32 %v1137_v11, %v499_v21  ;;  %v455_v27 = vadd.f32 %v1137_v11, %v454_v24 }
  0xb9   : > { %531 = vst [vmem:[%s1143_s9 + $0xa0] sm:$0xff] %v476_v18  ;;  %v755_v26 = vmul.f32 %v1171_v30, %v476_v18  ;;  %v740_v28 = vmul.f32 %v1126_v3, %v431_v23 }
  0xba   : > { %539 = vst [vmem:[%s1143_s9 + $0xe0] sm:$0xff] %v500_v22  ;;  %v748_v29 = vmul.f32 %v1188_v46, %v455_v27  ;;  %v688_v31 = vpop.permute.xlu1 %687  ;;  %v683_v32 = vpop.permute.xlu0 %682 }
  0xbb   : > { %787 = vst [vmem:[%s1150_s12 + $0xa0] sm:$0xff] %v755_v26 }
  0xbc   : > { %516 = vst [vmem:[%s1143_s9 + $0x28] sm:$0xff] %v431_v23 }
  0xbd   : > { %772 = vst [vmem:[%s1150_s12 + $0x28] sm:$0xff] %v740_v28 }
  0xbe   : > { %524 = vst [vmem:[%s1143_s9 + $0x68] sm:$0xff] %v455_v27  ;;  %v478_v33 = vpop.f32.mrf.mxu2  ;;  %v433_v35 = vpop.f32.mrf.mxu0 }
  0xbf   : > { %780 = vst [vmem:[%s1150_s12 + $0x68] sm:$0xff] %v748_v29  ;;  %v479_v30 = vadd.f32 %v1137_v11, %v478_v33  ;;  %v502_v34 = vpop.f32.mrf.mxu3  ;;  %v434_v36 = vadd.f32 %v1137_v11, %v433_v35  ;;  %v457_v37 = vpop.f32.mrf.mxu1 }
  0xc0   : > { %v503_v3 = vadd.f32 %v1137_v11, %v502_v34  ;;  %v458_v41 = vadd.f32 %v1137_v11, %v457_v37 }
  0xc1   : > { %532 = vst [vmem:[%s1143_s9 + $0xa8] sm:$0xff] %v479_v30  ;;  %v756_v40 = vmul.f32 %v683_v32, %v479_v30  ;;  %v741_v43 = vmul.f32 %v1158_v20, %v434_v36 }
  0xc2   : > { %540 = vst [vmem:[%s1143_s9 + $0xe8] sm:$0xff] %v503_v3  ;;  %v764_v42 = vmul.f32 %v723_v39, %v503_v3  ;;  %v703_v44 = vpop.permute.xlu1 %702  ;;  %v749_v46 = vmul.f32 %v1130_v8, %v458_v41  ;;  %v698_v47 = vpop.permute.xlu0 %697 }
  0xc3   : > { %788 = vst [vmem:[%s1150_s12 + $0xa8] sm:$0xff] %v756_v40  ;;  %v760_v48 = vmul.f32 %v703_v44, %v1178_v38  ;;  %v759_v49 = vmul.f32 %v698_v47, %v1163_v25 }
  0xc4   : > { %796 = vst [vmem:[%s1150_s12 + $0xe8] sm:$0xff] %v764_v42 }
  0xc5   : > { %517 = vst [vmem:[%s1143_s9 + $0x30] sm:$0xff] %v434_v36 }
  0xc6   : > { %773 = vst [vmem:[%s1150_s12 + $0x30] sm:$0xff] %v741_v43  ;;  %v481_v50 = vpop.f32.mrf.mxu2  ;;  %v436_v51 = vpop.f32.mrf.mxu0 }
  0xc7   : > { %525 = vst [vmem:[%s1143_s9 + $0x70] sm:$0xff] %v458_v41  ;;  %v482_v20 = vadd.f32 %v1137_v11, %v481_v50  ;;  %v505_v52 = vpop.f32.mrf.mxu3  ;;  %v437_v8 = vadd.f32 %v1137_v11, %v436_v51  ;;  %v460_v53 = vpop.f32.mrf.mxu1 }
  0xc8   : > { %781 = vst [vmem:[%s1150_s12 + $0x70] sm:$0xff] %v749_v46  ;;  %v461_v54 = vadd.f32 %v1137_v11, %v460_v53  ;;  %v506_v58 = vadd.f32 %v1137_v11, %v505_v52 }
  0xc9   : > { %792 = vst [vmem:[%s1150_s12 + $0xc8] sm:$0xff] %v760_v48  ;;  %v757_v38 = vmul.f32 %v688_v31, %v482_v20  ;;  %v742_v25 = vmul.f32 %v1155_v19, %v437_v8 }
  0xca   : > { %791 = vst [vmem:[%s1150_s12 + $0xc0] sm:$0xff] %v759_v49  ;;  %v718_v55 = vpop.permute.xlu1 %717  ;;  %v750_v56 = vmul.f32 %v1204_v62, %v461_v54  ;;  %v713_v57 = vpop.permute.xlu0 %712 }
  0xcb   : > { %533 = vst [vmem:[%s1143_s9 + $0xb0] sm:$0xff] %v482_v20  ;;  %v763_v59 = vmul.f32 %v718_v55, %v500_v22  ;;  %v762_v19 = vmul.f32 %v713_v57, %v1212_v5 }
  0xcc   : > { %789 = vst [vmem:[%s1150_s12 + $0xb0] sm:$0xff] %v757_v38 }
  0xcd   : > { %518 = vst [vmem:[%s1143_s9 + $0x38] sm:$0xff] %v437_v8 }
  0xce   : > { %774 = vst [vmem:[%s1150_s12 + $0x38] sm:$0xff] %v742_v25  ;;  %v484_v60 = vpop.f32.mrf.mxu2 }
  0xcf   : > { %526 = vst [vmem:[%s1143_s9 + $0x78] sm:$0xff] %v461_v54  ;;  %v485_v61 = vadd.f32 %v1137_v11, %v484_v60  ;;  %v508_v63 = vpop.f32.mrf.mxu3 }
  0xd0   : > { %782 = vst [vmem:[%s1150_s12 + $0x78] sm:$0xff] %v750_v56  ;;  %v509_v62 = vadd.f32 %v1137_v11, %v508_v63 }
  0xd1   : > { %541 = vst [vmem:[%s1143_s9 + $0xf0] sm:$0xff] %v506_v58  ;;  %v758_v0 = vmul.f32 %v1186_v45, %v485_v61 }
  0xd2   : > { %795 = vst [vmem:[%s1150_s12 + $0xe0] sm:$0xff] %v763_v59  ;;  %v733_v1 = vpop.permute.xlu1 %732  ;;  %v728_v6 = vpop.permute.xlu0 %727 }
  0xd3   : > { %794 = vst [vmem:[%s1150_s12 + $0xd8] sm:$0xff] %v762_v19  ;;  %v766_v4 = vmul.f32 %v733_v1, %v509_v62  ;;  %v765_v7 = vmul.f32 %v728_v6, %v506_v58 }
  0xd4   : > { %534 = vst [vmem:[%s1143_s9 + $0xb8] sm:$0xff] %v485_v61 }
  0xd5   : > { %790 = vst [vmem:[%s1150_s12 + $0xb8] sm:$0xff] %v758_v0 }
  0xd6   : > { %542 = vst [vmem:[%s1143_s9 + $0xf8] sm:$0xff] %v509_v62 }
  0xd7   : > { %798 = vst [vmem:[%s1150_s12 + $0xf8] sm:$0xff] %v766_v4 }
  0xd8   : > { %797 = vst [vmem:[%s1150_s12 + $0xf0] sm:$0xff] %v765_v7 }
  0xd9 PF: > { %s16_s18 = sadd.s32 1, %s970_s18  }
  0xda   : > { %p13_p4 = scmp.ge.s32.totalorder %s16_s18, 4  }
  0xdc   :  { %15 = sbr.rel (!%p13_p4) target bundleno = 1 (0x1), region = 81 }

// kernel: gc_withres.5
= control target key start
LH: loop header
LB: loop body
LE: loop exit
PB: predicated region body
PF: predicated region fallthrough
CT: control target
= control target key end

     0   :  { %s1681_s15 = smov 0   ;;  %s1683_s16 = smov 0   ;;  %s2115_s0 = inlined_call_operand.vmem [shape: f32[512,512], index: 0, kind: input, shape index: {}]   ;;  %s2116_s1 = inlined_call_operand.vmem [shape: f32[512,128], index: 1, kind: input, shape index: {}]   ;;  %s2117_s2 = inlined_call_operand.vmem [shape: f32[512,128], index: 2, kind: input, shape index: {}]   ;;  %s2118_s3 = inlined_call_operand.vmem [shape: f32[512,1], index: 3, kind: input, shape index: {}]   ;;  %s2119_s4 = inlined_call_operand.vmem [shape: f32[512,128], index: 4, kind: output, shape index: {}]  }
   0x1   :  { %s1685_s17 = smov 0   ;;  %s1687_s18 = smov 0  }
   0x2   :  { %s1689_s19 = smov 0   ;;  %s1691_s20 = smov 0  }
   0x3   :  { %s1693_s21 = smov 0  }
   0x4 LB: > { %s23_s22 = sadd.s32 1, %s1644_s19  ;;  %s26_s23 = sadd.s32 1, %s1648_s20  ;;  %s1652_s21 = sphi %s1693_s21, %s14_s21   ;;  %s1648_s20 = sphi %s1691_s20, %s2125_s20   ;;  %s1644_s19 = sphi %s1689_s19, %s2124_s19   ;;  %s1640_s18 = sphi %s1687_s18, %s2123_s18   ;;  %s1636_s17 = sphi %s1685_s17, %s2122_s17   ;;  %s1632_s16 = sphi %s1683_s16, %s2121_s16   ;;  %s1628_s15 = sphi %s1681_s15, %s2120_s15  }
   0x5   : > { %p24_p0 = scmp.ge.s32.totalorder %s23_s22, 2  ;;  %p42_p1 = scmp.ne.s32.totalorder %s1632_s16, %s1628_s15 }
   0x6   : > { %p43_p2 = scmp.eq.s32.totalorder %s1652_s21, 0  ;;  %s35_s27 = sadd.s32 1, %s1632_s16 }
   0x7   : > { %s2127_s22 = smov (%p24_p0, %s23_s22), 0  ;;  %s2129_s23 = smov (!%p24_p0, %s26_s23), %s1648_s20 }
   0x8   : > { %p44_p3 = por %p43_p2, %p42_p1  ;;  %p28_p4 = scmp.ge.s32.totalorder %s2129_s23, 2 }
   0x9   : > { %s31_s24 = ssub.s32 %s1644_s19, %s2127_s22  ;;  %p1484_p6 = scmp.ge.s32.totalorder %s1652_s21, 4 }
   0xa   : > { %s2131_s23 = smov (%p28_p4, %s2129_s23), 0 }
   0xb   : > { %s30_s25 = ssub.s32 %s1648_s20, %s2131_s23  ;;  %172 = sbr.rel (%p1484_p6) target bundleno = 87 (0x57), region = 16 }
   0xc   : > { %s32_s26 = sor.u32 %s31_s24, %s30_s25 }
   0xd   : > { %p33_p5 = scmp.eq.s32.totalorder %s32_s26, 0 }
   0xf   : > { %s1732_s28 = scalar_select %p33_p5, %s1632_s16, %s35_s27  }
  0x10   : > { %175 = sbr.rel (!%p44_p3) target bundleno = 87 (0x57), region = 20  ;;  %s177_s29 = sand.u32 (%p44_p3), 1, %s1632_s16  }
  0x11   : > { %s1487_s30 = sshll.u32 (%p44_p3), %s1644_s19, 1  ;;  %s1485_s5 = sshll.u32 (%p44_p3), %s177_s29, 9 }
  0x12   : > { %s1504_s6 = sshll.u32 (%p44_p3), %s1648_s20, 7  ;;  %s1746_s12 = scalar_lea.vmem (%p44_p3), [#allocation3], %s1485_s5 }
  0x13   : > { %s183_s7 = sadd.s32 (%p44_p3), %s1504_s6, %s1487_s30 }
  0x14   : > { %s1489_s8 = sshll.u32 (%p44_p3), %s183_s7, 3 }
  0x15   : > { %s1741_s11 = scalar_lea.vmem %s2115_s0, %s1489_s8 }
  0x16   : > { %v198_v0 = vld [vmem:[%s1741_s11] sm:$0xff]  ;;  %v200_v1 = vld [vmem:[%s1741_s11 + $0x8] sm:$0xff] }
  0x17   : > { %v202_v2 = vld [vmem:[%s1741_s11 + $0x20] sm:$0xff]  ;;  %199 = vst [vmem:[%s1746_s12] sm:$0xff] %v198_v0  ;;  %v204_v3 = vld [vmem:[%s1741_s11 + $0x28] sm:$0xff] }
  0x18   : > { %201 = vst [vmem:[%s1746_s12 + $0x8] sm:$0xff] %v200_v1  ;;  %v206_v4 = vld [vmem:[%s1741_s11 + $0x40] sm:$0xff]  ;;  %v208_v5 = vld [vmem:[%s1741_s11 + $0x48] sm:$0xff] }
  0x19   : > { %203 = vst [vmem:[%s1746_s12 + $0x10] sm:$0xff] %v202_v2  ;;  %v210_v6 = vld [vmem:[%s1741_s11 + $0x60] sm:$0xff]  ;;  %v212_v7 = vld [vmem:[%s1741_s11 + $0x68] sm:$0xff] }
  0x1a   : > { %205 = vst [vmem:[%s1746_s12 + $0x18] sm:$0xff] %v204_v3  ;;  %v214_v8 = vld [vmem:[%s1741_s11 + $0x80] sm:$0xff]  ;;  %v216_v9 = vld [vmem:[%s1741_s11 + $0x88] sm:$0xff] }
  0x1b   : > { %207 = vst [vmem:[%s1746_s12 + $0x20] sm:$0xff] %v206_v4  ;;  %v218_v10 = vld [vmem:[%s1741_s11 + $0xa0] sm:$0xff]  ;;  %v220_v11 = vld [vmem:[%s1741_s11 + $0xa8] sm:$0xff] }
  0x1c   : > { %209 = vst [vmem:[%s1746_s12 + $0x28] sm:$0xff] %v208_v5  ;;  %v222_v12 = vld [vmem:[%s1741_s11 + $0xc0] sm:$0xff]  ;;  %v224_v13 = vld [vmem:[%s1741_s11 + $0xc8] sm:$0xff] }
  0x1d   : > { %211 = vst [vmem:[%s1746_s12 + $0x30] sm:$0xff] %v210_v6  ;;  %v226_v14 = vld [vmem:[%s1741_s11 + $0xe0] sm:$0xff]  ;;  %v228_v15 = vld [vmem:[%s1741_s11 + $0xe8] sm:$0xff] }
  0x1e   : > { %213 = vst [vmem:[%s1746_s12 + $0x38] sm:$0xff] %v212_v7  ;;  %v230_v16 = vld [vmem:[%s1741_s11 + $0x100] sm:$0xff]  ;;  %v232_v17 = vld [vmem:[%s1741_s11 + $0x108] sm:$0xff] }
  0x1f   : > { %215 = vst [vmem:[%s1746_s12 + $0x40] sm:$0xff] %v214_v8  ;;  %v234_v18 = vld [vmem:[%s1741_s11 + $0x120] sm:$0xff]  ;;  %v236_v19 = vld [vmem:[%s1741_s11 + $0x128] sm:$0xff] }
  0x20   : > { %217 = vst [vmem:[%s1746_s12 + $0x48] sm:$0xff] %v216_v9  ;;  %v238_v20 = vld [vmem:[%s1741_s11 + $0x140] sm:$0xff]  ;;  %v240_v21 = vld [vmem:[%s1741_s11 + $0x148] sm:$0xff] }
  0x21   : > { %219 = vst [vmem:[%s1746_s12 + $0x50] sm:$0xff] %v218_v10  ;;  %v242_v22 = vld [vmem:[%s1741_s11 + $0x160] sm:$0xff]  ;;  %v244_v23 = vld [vmem:[%s1741_s11 + $0x168] sm:$0xff] }
  0x22   : > { %221 = vst [vmem:[%s1746_s12 + $0x58] sm:$0xff] %v220_v11  ;;  %v246_v24 = vld [vmem:[%s1741_s11 + $0x180] sm:$0xff]  ;;  %v248_v25 = vld [vmem:[%s1741_s11 + $0x188] sm:$0xff] }
  0x23   : > { %223 = vst [vmem:[%s1746_s12 + $0x60] sm:$0xff] %v222_v12  ;;  %v250_v26 = vld [vmem:[%s1741_s11 + $0x1a0] sm:$0xff]  ;;  %v252_v27 = vld [vmem:[%s1741_s11 + $0x1a8] sm:$0xff] }
  0x24   : > { %225 = vst [vmem:[%s1746_s12 + $0x68] sm:$0xff] %v224_v13  ;;  %v254_v28 = vld [vmem:[%s1741_s11 + $0x1c0] sm:$0xff]  ;;  %v256_v29 = vld [vmem:[%s1741_s11 + $0x1c8] sm:$0xff] }
  0x25   : > { %227 = vst [vmem:[%s1746_s12 + $0x70] sm:$0xff] %v226_v14  ;;  %v258_v30 = vld [vmem:[%s1741_s11 + $0x1e0] sm:$0xff]  ;;  %v260_v31 = vld [vmem:[%s1741_s11 + $0x1e8] sm:$0xff] }
  0x26   : > { %229 = vst [vmem:[%s1746_s12 + $0x78] sm:$0xff] %v228_v15  ;;  %v262_v32 = vld [vmem:[%s1741_s11 + $0x200] sm:$0xff]  ;;  %v264_v33 = vld [vmem:[%s1741_s11 + $0x208] sm:$0xff] }
  0x27   : > { %231 = vst [vmem:[%s1746_s12 + $0x80] sm:$0xff] %v230_v16  ;;  %v266_v34 = vld [vmem:[%s1741_s11 + $0x220] sm:$0xff]  ;;  %v268_v35 = vld [vmem:[%s1741_s11 + $0x228] sm:$0xff] }
  0x28   : > { %233 = vst [vmem:[%s1746_s12 + $0x88] sm:$0xff] %v232_v17  ;;  %v270_v36 = vld [vmem:[%s1741_s11 + $0x240] sm:$0xff]  ;;  %v272_v37 = vld [vmem:[%s1741_s11 + $0x248] sm:$0xff] }
  0x29   : > { %235 = vst [vmem:[%s1746_s12 + $0x90] sm:$0xff] %v234_v18  ;;  %v274_v38 = vld [vmem:[%s1741_s11 + $0x260] sm:$0xff]  ;;  %v276_v39 = vld [vmem:[%s1741_s11 + $0x268] sm:$0xff] }
  0x2a   : > { %237 = vst [vmem:[%s1746_s12 + $0x98] sm:$0xff] %v236_v19  ;;  %v278_v40 = vld [vmem:[%s1741_s11 + $0x280] sm:$0xff]  ;;  %v280_v41 = vld [vmem:[%s1741_s11 + $0x288] sm:$0xff] }
  0x2b   : > { %239 = vst [vmem:[%s1746_s12 + $0xa0] sm:$0xff] %v238_v20  ;;  %v282_v42 = vld [vmem:[%s1741_s11 + $0x2a0] sm:$0xff]  ;;  %v284_v43 = vld [vmem:[%s1741_s11 + $0x2a8] sm:$0xff] }
  0x2c   : > { %241 = vst [vmem:[%s1746_s12 + $0xa8] sm:$0xff] %v240_v21  ;;  %v286_v44 = vld [vmem:[%s1741_s11 + $0x2c0] sm:$0xff]  ;;  %v288_v45 = vld [vmem:[%s1741_s11 + $0x2c8] sm:$0xff] }
  0x2d   : > { %243 = vst [vmem:[%s1746_s12 + $0xb0] sm:$0xff] %v242_v22  ;;  %v290_v46 = vld [vmem:[%s1741_s11 + $0x2e0] sm:$0xff]  ;;  %v292_v47 = vld [vmem:[%s1741_s11 + $0x2e8] sm:$0xff] }
  0x2e   : > { %245 = vst [vmem:[%s1746_s12 + $0xb8] sm:$0xff] %v244_v23  ;;  %v294_v48 = vld [vmem:[%s1741_s11 + $0x300] sm:$0xff]  ;;  %v296_v49 = vld [vmem:[%s1741_s11 + $0x308] sm:$0xff] }
  0x2f   : > { %247 = vst [vmem:[%s1746_s12 + $0xc0] sm:$0xff] %v246_v24  ;;  %v298_v50 = vld [vmem:[%s1741_s11 + $0x320] sm:$0xff]  ;;  %v300_v51 = vld [vmem:[%s1741_s11 + $0x328] sm:$0xff] }
  0x30   : > { %249 = vst [vmem:[%s1746_s12 + $0xc8] sm:$0xff] %v248_v25  ;;  %v302_v52 = vld [vmem:[%s1741_s11 + $0x340] sm:$0xff]  ;;  %v304_v53 = vld [vmem:[%s1741_s11 + $0x348] sm:$0xff] }
  0x31   : > { %251 = vst [vmem:[%s1746_s12 + $0xd0] sm:$0xff] %v250_v26  ;;  %v306_v54 = vld [vmem:[%s1741_s11 + $0x360] sm:$0xff]  ;;  %v308_v55 = vld [vmem:[%s1741_s11 + $0x368] sm:$0xff] }
  0x32   : > { %253 = vst [vmem:[%s1746_s12 + $0xd8] sm:$0xff] %v252_v27  ;;  %v310_v56 = vld [vmem:[%s1741_s11 + $0x380] sm:$0xff]  ;;  %v312_v57 = vld [vmem:[%s1741_s11 + $0x388] sm:$0xff] }
  0x33   : > { %255 = vst [vmem:[%s1746_s12 + $0xe0] sm:$0xff] %v254_v28  ;;  %v314_v58 = vld [vmem:[%s1741_s11 + $0x3a0] sm:$0xff]  ;;  %v316_v59 = vld [vmem:[%s1741_s11 + $0x3a8] sm:$0xff] }
  0x34   : > { %257 = vst [vmem:[%s1746_s12 + $0xe8] sm:$0xff] %v256_v29  ;;  %v318_v60 = vld [vmem:[%s1741_s11 + $0x3c0] sm:$0xff]  ;;  %v320_v61 = vld [vmem:[%s1741_s11 + $0x3c8] sm:$0xff] }
  0x35   : > { %259 = vst [vmem:[%s1746_s12 + $0xf0] sm:$0xff] %v258_v30  ;;  %v322_v62 = vld [vmem:[%s1741_s11 + $0x3e0] sm:$0xff]  ;;  %v324_v63 = vld [vmem:[%s1741_s11 + $0x3e8] sm:$0xff] }
  0x36   : > { %261 = vst [vmem:[%s1746_s12 + $0xf8] sm:$0xff] %v260_v31 }
  0x37   : > { %263 = vst [vmem:[%s1746_s12 + $0x100] sm:$0xff] %v262_v32 }
  0x38   : > { %265 = vst [vmem:[%s1746_s12 + $0x108] sm:$0xff] %v264_v33 }
  0x39   : > { %267 = vst [vmem:[%s1746_s12 + $0x110] sm:$0xff] %v266_v34 }
  0x3a   : > { %269 = vst [vmem:[%s1746_s12 + $0x118] sm:$0xff] %v268_v35 }
  0x3b   : > { %271 = vst [vmem:[%s1746_s12 + $0x120] sm:$0xff] %v270_v36 }
  0x3c   : > { %273 = vst [vmem:[%s1746_s12 + $0x128] sm:$0xff] %v272_v37 }
  0x3d   : > { %275 = vst [vmem:[%s1746_s12 + $0x130] sm:$0xff] %v274_v38 }
  0x3e   : > { %277 = vst [vmem:[%s1746_s12 + $0x138] sm:$0xff] %v276_v39 }
  0x3f   : > { %279 = vst [vmem:[%s1746_s12 + $0x140] sm:$0xff] %v278_v40 }
  0x40   : > { %281 = vst [vmem:[%s1746_s12 + $0x148] sm:$0xff] %v280_v41 }
  0x41   : > { %283 = vst [vmem:[%s1746_s12 + $0x150] sm:$0xff] %v282_v42 }
  0x42   : > { %285 = vst [vmem:[%s1746_s12 + $0x158] sm:$0xff] %v284_v43 }
  0x43   : > { %287 = vst [vmem:[%s1746_s12 + $0x160] sm:$0xff] %v286_v44 }
  0x44   : > { %289 = vst [vmem:[%s1746_s12 + $0x168] sm:$0xff] %v288_v45 }
  0x45   : > { %291 = vst [vmem:[%s1746_s12 + $0x170] sm:$0xff] %v290_v46 }
  0x46   : > { %293 = vst [vmem:[%s1746_s12 + $0x178] sm:$0xff] %v292_v47 }
  0x47   : > { %295 = vst [vmem:[%s1746_s12 + $0x180] sm:$0xff] %v294_v48 }
  0x48   : > { %297 = vst [vmem:[%s1746_s12 + $0x188] sm:$0xff] %v296_v49 }
  0x49   : > { %299 = vst [vmem:[%s1746_s12 + $0x190] sm:$0xff] %v298_v50 }
  0x4a   : > { %301 = vst [vmem:[%s1746_s12 + $0x198] sm:$0xff] %v300_v51 }
  0x4b   : > { %303 = vst [vmem:[%s1746_s12 + $0x1a0] sm:$0xff] %v302_v52 }
  0x4c   : > { %305 = vst [vmem:[%s1746_s12 + $0x1a8] sm:$0xff] %v304_v53 }
  0x4d   : > { %307 = vst [vmem:[%s1746_s12 + $0x1b0] sm:$0xff] %v306_v54 }
  0x4e   : > { %309 = vst [vmem:[%s1746_s12 + $0x1b8] sm:$0xff] %v308_v55 }
  0x4f   : > { %311 = vst [vmem:[%s1746_s12 + $0x1c0] sm:$0xff] %v310_v56 }
  0x50   : > { %313 = vst [vmem:[%s1746_s12 + $0x1c8] sm:$0xff] %v312_v57 }
  0x51   : > { %315 = vst [vmem:[%s1746_s12 + $0x1d0] sm:$0xff] %v314_v58 }
  0x52   : > { %317 = vst [vmem:[%s1746_s12 + $0x1d8] sm:$0xff] %v316_v59 }
  0x53   : > { %319 = vst [vmem:[%s1746_s12 + $0x1e0] sm:$0xff] %v318_v60 }
  0x54   : > { %321 = vst [vmem:[%s1746_s12 + $0x1e8] sm:$0xff] %v320_v61 }
  0x55   : > { %323 = vst [vmem:[%s1746_s12 + $0x1f0] sm:$0xff] %v322_v62 }
  0x56   : > { %325 = vst [vmem:[%s1746_s12 + $0x1f8] sm:$0xff] %v324_v63 }
  0x57 PF: > { %p1490_p7 = scmp.ge.s32.totalorder %s1652_s21, 1  ;;  %p357_p8 = scmp.lt.s32.totalorder %s1652_s21, 5 }
  0x59   : > { %p358_p9 = pnand %p1490_p7, %p357_p8 }
  0x5a   : > { %s364_s13 = sand.u32 (!%p358_p9), 1, %s1628_s15   ;;  %s1492_s14 = sshll.u32 (!%p358_p9), %s1636_s17, 5 }
  0x5b   : > { %361 = sbr.rel (%p358_p9) target bundleno = 638 (0x27e), region = 55  ;;  %s1491_s24 = sshll.u32 (!%p358_p9), %s364_s13, 9 }
  0x5c   : > { %p407_p10 = scmp.lt.s32.totalorder (!%p358_p9), %s1492_s14, 63  ;;  %s1494_s25 = sshll.u32 (!%p358_p9), %s1640_s18, 5 }
  0x5d   : > { %p413_p11 = scmp.lt.s32.totalorder (!%p358_p9), %s1494_s25, 63  ;;  %s1898_s13 = scalar_lea.vmem (!%p358_p9), [#allocation3], %s1491_s24 }
  0x5e   : > { %p1500_p12 = scmp.ne.s32.totalorder (!%p358_p9), %s1636_s17, 0 }
  0x60   : > { %s2133_s14 = smov (!%p407_p10, %s1492_s14), 63  ;;  %s2135_s25 = smov (!%p413_p11, %s1494_s25), 63 }
  0x61   : > { %s1493_s26 = sshll.u32 %s2133_s14, 3  ;;  %s1495_s5 = sshll.u32 %s2135_s25, 3 }
  0x62   : > { %s1881_s30 = scalar_lea.vmem %s2116_s1, %s1493_s26  ;;  %s1886_s8 = scalar_lea.vmem %s2117_s2, %s1495_s5 }
  0x63   : > { %s1891_s10 = scalar_lea.vmem %s2118_s3, %s1495_s5  ;;  %s1896_s12 = scalar_lea.vmem %s2119_s4, %s1495_s5 }
  0x64   : > { %433 = sbr.rel (%p1500_p12) target bundleno = 138 (0x8a), region = 63 }
  0x69   : > { %v1654_v0 = vmov 0.0  }
  0x6a   : > { %434 = vst [vmem:[#allocation2 + $0xb0] sm:$0xff] %v1654_v0 }
  0x6b   : > { %435 = vst [vmem:[#allocation2] sm:$0xff] %v1654_v0 }
  0x6c   : > { %436 = vst [vmem:[#allocation2 + $0xd8] sm:$0xff] %v1654_v0 }
  0x6d   : > { %437 = vst [vmem:[#allocation2 + $0x18] sm:$0xff] %v1654_v0 }
  0x6e   : > { %438 = vst [vmem:[#allocation2 + $0x50] sm:$0xff] %v1654_v0 }
  0x6f   : > { %439 = vst [vmem:[#allocation2 + $0x68] sm:$0xff] %v1654_v0 }
  0x70   : > { %440 = vst [vmem:[#allocation2 + $0x30] sm:$0xff] %v1654_v0 }
  0x71   : > { %441 = vst [vmem:[#allocation2 + $0x48] sm:$0xff] %v1654_v0 }
  0x72   : > { %442 = vst [vmem:[#allocation2 + $0x80] sm:$0xff] %v1654_v0 }
  0x73   : > { %443 = vst [vmem:[#allocation2 + $0x88] sm:$0xff] %v1654_v0 }
  0x74   : > { %444 = vst [vmem:[#allocation2 + $0xe8] sm:$0xff] %v1654_v0 }
  0x75   : > { %445 = vst [vmem:[#allocation2 + $0xb8] sm:$0xff] %v1654_v0 }
  0x76   : > { %446 = vst [vmem:[#allocation2 + $0x60] sm:$0xff] %v1654_v0 }
  0x77   : > { %447 = vst [vmem:[#allocation2 + $0xf0] sm:$0xff] %v1654_v0 }
  0x78   : > { %448 = vst [vmem:[#allocation2 + $0x8] sm:$0xff] %v1654_v0 }
  0x79   : > { %449 = vst [vmem:[#allocation2 + $0x78] sm:$0xff] %v1654_v0 }
  0x7a   : > { %450 = vst [vmem:[#allocation2 + $0x38] sm:$0xff] %v1654_v0 }
  0x7b   : > { %451 = vst [vmem:[#allocation2 + $0x58] sm:$0xff] %v1654_v0 }
  0x7c   : > { %452 = vst [vmem:[#allocation2 + $0x40] sm:$0xff] %v1654_v0 }
  0x7d   : > { %453 = vst [vmem:[#allocation2 + $0xc8] sm:$0xff] %v1654_v0 }
  0x7e   : > { %454 = vst [vmem:[#allocation2 + $0xe0] sm:$0xff] %v1654_v0 }
  0x7f   : > { %455 = vst [vmem:[#allocation2 + $0x90] sm:$0xff] %v1654_v0 }
  0x80   : > { %456 = vst [vmem:[#allocation2 + $0x70] sm:$0xff] %v1654_v0 }
  0x81   : > { %457 = vst [vmem:[#allocation2 + $0xc0] sm:$0xff] %v1654_v0 }
  0x82   : > { %458 = vst [vmem:[#allocation2 + $0xa8] sm:$0xff] %v1654_v0 }
  0x83   : > { %459 = vst [vmem:[#allocation2 + $0xd0] sm:$0xff] %v1654_v0 }
  0x84   : > { %460 = vst [vmem:[#allocation2 + $0x10] sm:$0xff] %v1654_v0 }
  0x85   : > { %461 = vst [vmem:[#allocation2 + $0x28] sm:$0xff] %v1654_v0 }
  0x86   : > { %462 = vst [vmem:[#allocation2 + $0xa0] sm:$0xff] %v1654_v0 }
  0x87   : > { %463 = vst [vmem:[#allocation2 + $0xf8] sm:$0xff] %v1654_v0 }
  0x88   : > { %464 = vst [vmem:[#allocation2 + $0x20] sm:$0xff] %v1654_v0 }
  0x89   : > { %465 = vst [vmem:[#allocation2 + $0x98] sm:$0xff] %v1654_v0 }
  0x8a PF: > { %v577_v1 = vld [vmem:[%s1881_s30 + $0x78] sm:$0xff]  ;;  %v576_v3 = vld [vmem:[%s1881_s30 + $0x70] sm:$0xff]  ;;  %v575_v5 = vld [vmem:[%s1881_s30 + $0x68] sm:$0xff]  ;;  %p1501_p13 = scmp.ne.s32.totalorder %s1636_s17, 1 }
  0x8b   : > { %v593_v2 = vld [vmem:[%s1881_s30 + $0xf8] sm:$0xff]  ;;  %1505 = vmatpush.msra.mxu2 %v577_v1  ;;  %v592_v4 = vld [vmem:[%s1881_s30 + $0xf0] sm:$0xff]  ;;  %v591_v6 = vld [vmem:[%s1881_s30 + $0xe8] sm:$0xff]  ;;  %594 = vmatpush.msra.mxu0 %v577_v1 }
  0x8c   : > { %1521 = vmatpush.msra.mxu3 %v593_v2  ;;  %707 = vmatpush.msra.mxu1 %v593_v2  ;;  %v574_v7 = vld [vmem:[%s1881_s30 + $0x60] sm:$0xff]  ;;  %v573_v9 = vld [vmem:[%s1881_s30 + $0x58] sm:$0xff]  ;;  %v572_v11 = vld [vmem:[%s1881_s30 + $0x50] sm:$0xff] }
  0x8d   : > { %1506 = vmatpush.msra.mxu2 %v576_v3  ;;  %v590_v8 = vld [vmem:[%s1881_s30 + $0xe0] sm:$0xff]  ;;  %595 = vmatpush.msra.mxu0 %v576_v3  ;;  %v589_v10 = vld [vmem:[%s1881_s30 + $0xd8] sm:$0xff]  ;;  %v588_v12 = vld [vmem:[%s1881_s30 + $0xd0] sm:$0xff] }
  0x8e   : > { %1522 = vmatpush.msra.mxu3 %v592_v4  ;;  %708 = vmatpush.msra.mxu1 %v592_v4  ;;  %v571_v13 = vld [vmem:[%s1881_s30 + $0x48] sm:$0xff]  ;;  %v570_v15 = vld [vmem:[%s1881_s30 + $0x40] sm:$0xff]  ;;  %v569_v17 = vld [vmem:[%s1881_s30 + $0x38] sm:$0xff] }
  0x8f   : > { %1507 = vmatpush.msra.mxu2 %v575_v5  ;;  %596 = vmatpush.msra.mxu0 %v575_v5  ;;  %v587_v14 = vld [vmem:[%s1881_s30 + $0xc8] sm:$0xff]  ;;  %v586_v16 = vld [vmem:[%s1881_s30 + $0xc0] sm:$0xff]  ;;  %v585_v18 = vld [vmem:[%s1881_s30 + $0xb8] sm:$0xff] }
  0x90   : > { %1523 = vmatpush.msra.mxu3 %v591_v6  ;;  %709 = vmatpush.msra.mxu1 %v591_v6  ;;  %v568_v19 = vld [vmem:[%s1881_s30 + $0x30] sm:$0xff]  ;;  %v567_v21 = vld [vmem:[%s1881_s30 + $0x28] sm:$0xff]  ;;  %v566_v23 = vld [vmem:[%s1881_s30 + $0x20] sm:$0xff] }
  0x91   : > { %1508 = vmatpush.msra.mxu2 %v574_v7  ;;  %597 = vmatpush.msra.mxu0 %v574_v7  ;;  %v584_v20 = vld [vmem:[%s1881_s30 + $0xb0] sm:$0xff]  ;;  %v583_v22 = vld [vmem:[%s1881_s30 + $0xa8] sm:$0xff]  ;;  %v582_v24 = vld [vmem:[%s1881_s30 + $0xa0] sm:$0xff] }
  0x92   : > { %1524 = vmatpush.msra.mxu3 %v590_v8  ;;  %710 = vmatpush.msra.mxu1 %v590_v8  ;;  %v565_v25 = vld [vmem:[%s1881_s30 + $0x18] sm:$0xff]  ;;  %v564_v27 = vld [vmem:[%s1881_s30 + $0x10] sm:$0xff]  ;;  %v563_v29 = vld [vmem:[%s1881_s30 + $0x8] sm:$0xff] }
  0x93   : > { %1509 = vmatpush.msra.mxu2 %v573_v9  ;;  %598 = vmatpush.msra.mxu0 %v573_v9  ;;  %v581_v26 = vld [vmem:[%s1881_s30 + $0x98] sm:$0xff]  ;;  %v580_v28 = vld [vmem:[%s1881_s30 + $0x90] sm:$0xff]  ;;  %v579_v30 = vld [vmem:[%s1881_s30 + $0x88] sm:$0xff] }
  0x94   : > { %1525 = vmatpush.msra.mxu3 %v589_v10  ;;  %711 = vmatpush.msra.mxu1 %v589_v10  ;;  %v562_v31 = vld [vmem:[%s1881_s30] sm:$0xff]  ;;  %v531_v34 = vld [vmem:[%s1898_s13 + $0x108] sm:$0xff]  ;;  %v532_v37 = vld [vmem:[%s1898_s13 + $0x110] sm:$0xff] }
  0x95   : > { %1510 = vmatpush.msra.mxu2 %v572_v11  ;;  %599 = vmatpush.msra.mxu0 %v572_v11  ;;  %v578_v32 = vld [vmem:[%s1881_s30 + $0x80] sm:$0xff]  ;;  %v499_v36 = vld [vmem:[%s1898_s13 + $0x8] sm:$0xff]  ;;  %v533_v38 = vld [vmem:[%s1898_s13 + $0x118] sm:$0xff] }
  0x96   : > { %1526 = vmatpush.msra.mxu3 %v588_v12  ;;  %712 = vmatpush.msra.mxu1 %v588_v12  ;;  %v530_v33 = vld [vmem:[%s1898_s13 + $0x100] sm:$0xff]  ;;  %v500_v39 = vld [vmem:[%s1898_s13 + $0x10] sm:$0xff]  ;;  %v501_v40 = vld [vmem:[%s1898_s13 + $0x18] sm:$0xff] }
  0x97   : > { %1511 = vmatpush.msra.mxu2 %v571_v13  ;;  %600 = vmatpush.msra.mxu0 %v571_v13  ;;  %v498_v35 = vld [vmem:[%s1898_s13] sm:$0xff]  ;;  %v535_v42 = vld [vmem:[%s1898_s13 + $0x128] sm:$0xff]  ;;  %v536_v45 = vld [vmem:[%s1898_s13 + $0x130] sm:$0xff] }
  0x98   : > { %1527 = vmatpush.msra.mxu3 %v587_v14  ;;  %713 = vmatpush.msra.mxu1 %v587_v14  ;;  %v534_v41 = vld [vmem:[%s1898_s13 + $0x120] sm:$0xff]  ;;  %v503_v44 = vld [vmem:[%s1898_s13 + $0x28] sm:$0xff]  ;;  %v537_v46 = vld [vmem:[%s1898_s13 + $0x138] sm:$0xff] }
  0x99   : > { %1512 = vmatpush.msra.mxu2 %v570_v15  ;;  %601 = vmatpush.msra.mxu0 %v570_v15  ;;  %v502_v43 = vld [vmem:[%s1898_s13 + $0x20] sm:$0xff]  ;;  %v504_v47 = vld [vmem:[%s1898_s13 + $0x30] sm:$0xff]  ;;  %v505_v48 = vld [vmem:[%s1898_s13 + $0x38] sm:$0xff] }
  0x9a   : > { %1528 = vmatpush.msra.mxu3 %v586_v16  ;;  %714 = vmatpush.msra.mxu1 %v586_v16  ;;  %v538_v49 = vld [vmem:[%s1898_s13 + $0x140] sm:$0xff]  ;;  %v539_v50 = vld [vmem:[%s1898_s13 + $0x148] sm:$0xff]  ;;  %v540_v53 = vld [vmem:[%s1898_s13 + $0x150] sm:$0xff] }
  0x9b   : > { %1513 = vmatpush.msra.mxu2 %v569_v17  ;;  %602 = vmatpush.msra.mxu0 %v569_v17  ;;  %v506_v51 = vld [vmem:[%s1898_s13 + $0x40] sm:$0xff]  ;;  %v507_v52 = vld [vmem:[%s1898_s13 + $0x48] sm:$0xff]  ;;  %v541_v54 = vld [vmem:[%s1898_s13 + $0x158] sm:$0xff] }
  0x9c   : > { %1529 = vmatpush.msra.mxu3 %v585_v18  ;;  %715 = vmatpush.msra.mxu1 %v585_v18  ;;  %v508_v55 = vld [vmem:[%s1898_s13 + $0x50] sm:$0xff]  ;;  %v509_v56 = vld [vmem:[%s1898_s13 + $0x58] sm:$0xff]  ;;  %v542_v57 = vld [vmem:[%s1898_s13 + $0x160] sm:$0xff] }
  0x9d   : > { %1514 = vmatpush.msra.mxu2 %v568_v19  ;;  %603 = vmatpush.msra.mxu0 %v568_v19  ;;  %v543_v58 = vld [vmem:[%s1898_s13 + $0x168] sm:$0xff]  ;;  %v510_v59 = vld [vmem:[%s1898_s13 + $0x60] sm:$0xff]  ;;  %v544_v61 = vld [vmem:[%s1898_s13 + $0x170] sm:$0xff] }
  0x9e   : > { %1530 = vmatpush.msra.mxu3 %v584_v20  ;;  %716 = vmatpush.msra.mxu1 %v584_v20  ;;  %v511_v60 = vld [vmem:[%s1898_s13 + $0x68] sm:$0xff]  ;;  %v545_v62 = vld [vmem:[%s1898_s13 + $0x178] sm:$0xff]  ;;  %v512_v63 = vld [vmem:[%s1898_s13 + $0x70] sm:$0xff] }
  0x9f   : > { %1515 = vmatpush.msra.mxu2 %v567_v21  ;;  %604 = vmatpush.msra.mxu0 %v567_v21  ;;  %v513_v0 = vld [vmem:[%s1898_s13 + $0x78] sm:$0xff]  ;;  %v546_v1 = vld [vmem:[%s1898_s13 + $0x180] sm:$0xff]  ;;  %v547_v2 = vld [vmem:[%s1898_s13 + $0x188] sm:$0xff] }
  0xa0   : > { %1531 = vmatpush.msra.mxu3 %v583_v22  ;;  %717 = vmatpush.msra.mxu1 %v583_v22  ;;  %v514_v3 = vld [vmem:[%s1898_s13 + $0x80] sm:$0xff]  ;;  %v515_v4 = vld [vmem:[%s1898_s13 + $0x88] sm:$0xff]  ;;  %v548_v5 = vld [vmem:[%s1898_s13 + $0x190] sm:$0xff] }
  0xa1   : > { %1516 = vmatpush.msra.mxu2 %v566_v23  ;;  %605 = vmatpush.msra.mxu0 %v566_v23  ;;  %v549_v6 = vld [vmem:[%s1898_s13 + $0x198] sm:$0xff]  ;;  %v516_v7 = vld [vmem:[%s1898_s13 + $0x90] sm:$0xff]  ;;  %v550_v9 = vld [vmem:[%s1898_s13 + $0x1a0] sm:$0xff] }
  0xa2   : > { %1532 = vmatpush.msra.mxu3 %v582_v24  ;;  %718 = vmatpush.msra.mxu1 %v582_v24  ;;  %v517_v8 = vld [vmem:[%s1898_s13 + $0x98] sm:$0xff]  ;;  %v551_v10 = vld [vmem:[%s1898_s13 + $0x1a8] sm:$0xff]  ;;  %v518_v11 = vld [vmem:[%s1898_s13 + $0xa0] sm:$0xff] }
  0xa3   : > { %1517 = vmatpush.msra.mxu2 %v565_v25  ;;  %606 = vmatpush.msra.mxu0 %v565_v25  ;;  %v519_v12 = vld [vmem:[%s1898_s13 + $0xa8] sm:$0xff]  ;;  %v552_v13 = vld [vmem:[%s1898_s13 + $0x1b0] sm:$0xff]  ;;  %v553_v14 = vld [vmem:[%s1898_s13 + $0x1b8] sm:$0xff] }
  0xa4   : > { %1533 = vmatpush.msra.mxu3 %v581_v26  ;;  %719 = vmatpush.msra.mxu1 %v581_v26  ;;  %v520_v15 = vld [vmem:[%s1898_s13 + $0xb0] sm:$0xff]  ;;  %v521_v16 = vld [vmem:[%s1898_s13 + $0xb8] sm:$0xff]  ;;  %v554_v17 = vld [vmem:[%s1898_s13 + $0x1c0] sm:$0xff] }
  0xa5   : > { %1518 = vmatpush.msra.mxu2 %v564_v27  ;;  %607 = vmatpush.msra.mxu0 %v564_v27  ;;  %v555_v18 = vld [vmem:[%s1898_s13 + $0x1c8] sm:$0xff]  ;;  %v522_v19 = vld [vmem:[%s1898_s13 + $0xc0] sm:$0xff]  ;;  %v556_v21 = vld [vmem:[%s1898_s13 + $0x1d0] sm:$0xff] }
  0xa6   : > { %1534 = vmatpush.msra.mxu3 %v580_v28  ;;  %720 = vmatpush.msra.mxu1 %v580_v28  ;;  %v523_v20 = vld [vmem:[%s1898_s13 + $0xc8] sm:$0xff]  ;;  %v557_v22 = vld [vmem:[%s1898_s13 + $0x1d8] sm:$0xff]  ;;  %v524_v23 = vld [vmem:[%s1898_s13 + $0xd0] sm:$0xff] }
  0xa7   : > { %1519 = vmatpush.msra.mxu2 %v563_v29  ;;  %608 = vmatpush.msra.mxu0 %v563_v29  ;;  %v525_v24 = vld [vmem:[%s1898_s13 + $0xd8] sm:$0xff]  ;;  %v558_v25 = vld [vmem:[%s1898_s13 + $0x1e0] sm:$0xff]  ;;  %v559_v26 = vld [vmem:[%s1898_s13 + $0x1e8] sm:$0xff] }
  0xa8   : > { %1535 = vmatpush.msra.mxu3 %v579_v30  ;;  %721 = vmatpush.msra.mxu1 %v579_v30  ;;  %v526_v27 = vld [vmem:[%s1898_s13 + $0xe0] sm:$0xff]  ;;  %v527_v28 = vld [vmem:[%s1898_s13 + $0xe8] sm:$0xff]  ;;  %v560_v29 = vld [vmem:[%s1898_s13 + $0x1f0] sm:$0xff] }
  0xa9   : > { %1520 = vmatpush.msra.mxu2 %v562_v31  ;;  %609 = vmatpush.msra.mxu0 %v562_v31  ;;  %v561_v30 = vld [vmem:[%s1898_s13 + $0x1f8] sm:$0xff]  ;;  %v528_v31 = vld [vmem:[%s1898_s13 + $0xf0] sm:$0xff] }
  0xaa   : > { %1536 = vmatpush.msra.mxu3 %v578_v32  ;;  %658 = vmatmul.f32.vlgmr.msra.gmra.mxu2 %v530_v33 }
  0xab   : > { %771 = vmatmul.f32.vlgmr.msra.gmra.mxu3 %v531_v34  ;;  %722 = vmatpush.msra.mxu1 %v578_v32  ;;  %v529_v32 = vld [vmem:[%s1898_s13 + $0xf8] sm:$0xff]  ;;  %v466_v34 = vld [vmem:[#allocation2 + $0xb0] sm:$0xff] }
  0xac   : > { %610 = vmatmul.f32.vlgmr.msra.gmra.mxu0 %v498_v35  ;;  %723 = vmatmul.f32.vlgmr.msra.gmra.mxu1 %v499_v36 }
  0xb2   : > { %661 = vmatmul.f32.gmra.mxu2 %v532_v37 }
  0xb3   : > { %774 = vmatmul.f32.gmra.mxu3 %v533_v38 }
  0xb4   : > { %613 = vmatmul.f32.gmra.mxu0 %v500_v39  ;;  %726 = vmatmul.f32.gmra.mxu1 %v501_v40  ;;  %v482_v39 = vld [vmem:[#allocation2 + $0x38] sm:$0xff] }
  0xba   : > { %664 = vmatmul.f32.gmra.mxu2 %v534_v41 }
  0xbb   : > { %777 = vmatmul.f32.gmra.mxu3 %v535_v42 }
  0xbc   : > { %616 = vmatmul.f32.gmra.mxu0 %v502_v43  ;;  %729 = vmatmul.f32.gmra.mxu1 %v503_v44  ;;  %v467_v44 = vld [vmem:[#allocation2] sm:$0xff] }
  0xc2   : > { %667 = vmatmul.f32.gmra.mxu2 %v536_v45 }
  0xc3   : > { %780 = vmatmul.f32.gmra.mxu3 %v537_v46 }
  0xc4   : > { %619 = vmatmul.f32.gmra.mxu0 %v504_v47  ;;  %732 = vmatmul.f32.gmra.mxu1 %v505_v48 }
  0xca   : > { %670 = vmatmul.f32.gmra.mxu2 %v538_v49  ;;  %v483_v49 = vld [vmem:[#allocation2 + $0x58] sm:$0xff] }
  0xcb   : > { %783 = vmatmul.f32.gmra.mxu3 %v539_v50 }
  0xcc   : > { %622 = vmatmul.f32.gmra.mxu0 %v506_v51  ;;  %735 = vmatmul.f32.gmra.mxu1 %v507_v52 }
  0xd2   : > { %673 = vmatmul.f32.gmra.mxu2 %v540_v53 }
  0xd3   : > { %786 = vmatmul.f32.gmra.mxu3 %v541_v54  ;;  %v468_v54 = vld [vmem:[#allocation2 + $0xd8] sm:$0xff] }
  0xd4   : > { %625 = vmatmul.f32.gmra.mxu0 %v508_v55  ;;  %738 = vmatmul.f32.gmra.mxu1 %v509_v56 }
  0xda   : > { %676 = vmatmul.f32.gmra.mxu2 %v542_v57 }
  0xdb   : > { %789 = vmatmul.f32.gmra.mxu3 %v543_v58 }
  0xdc   : > { %628 = vmatmul.f32.gmra.mxu0 %v510_v59  ;;  %741 = vmatmul.f32.gmra.mxu1 %v511_v60  ;;  %v484_v59 = vld [vmem:[#allocation2 + $0x40] sm:$0xff] }
  0xe2   : > { %679 = vmatmul.f32.gmra.mxu2 %v544_v61 }
  0xe3   : > { %792 = vmatmul.f32.gmra.mxu3 %v545_v62 }
  0xe4   : > { %631 = vmatmul.f32.gmra.mxu0 %v512_v63  ;;  %744 = vmatmul.f32.gmra.mxu1 %v513_v0  ;;  %v469_v0 = vld [vmem:[#allocation2 + $0x18] sm:$0xff] }
  0xea   : > { %682 = vmatmul.f32.gmra.mxu2 %v546_v1 }
  0xeb   : > { %795 = vmatmul.f32.gmra.mxu3 %v547_v2 }
  0xec   : > { %634 = vmatmul.f32.gmra.mxu0 %v514_v3  ;;  %747 = vmatmul.f32.gmra.mxu1 %v515_v4 }
  0xf2   : > { %685 = vmatmul.f32.gmra.mxu2 %v548_v5  ;;  %v485_v5 = vld [vmem:[#allocation2 + $0xc8] sm:$0xff] }
  0xf3   : > { %798 = vmatmul.f32.gmra.mxu3 %v549_v6 }
  0xf4   : > { %637 = vmatmul.f32.gmra.mxu0 %v516_v7  ;;  %750 = vmatmul.f32.gmra.mxu1 %v517_v8 }
  0xfa   : > { %688 = vmatmul.f32.gmra.mxu2 %v550_v9 }
  0xfb   : > { %801 = vmatmul.f32.gmra.mxu3 %v551_v10  ;;  %v470_v10 = vld [vmem:[#allocation2 + $0x50] sm:$0xff] }
  0xfc   : > { %640 = vmatmul.f32.gmra.mxu0 %v518_v11  ;;  %753 = vmatmul.f32.gmra.mxu1 %v519_v12 }
 0x102   : > { %691 = vmatmul.f32.gmra.mxu2 %v552_v13 }
 0x103   : > { %804 = vmatmul.f32.gmra.mxu3 %v553_v14 }
 0x104   : > { %643 = vmatmul.f32.gmra.mxu0 %v520_v15  ;;  %756 = vmatmul.f32.gmra.mxu1 %v521_v16  ;;  %v486_v15 = vld [vmem:[#allocation2 + $0xe0] sm:$0xff] }
 0x10a   : > { %694 = vmatmul.f32.gmra.mxu2 %v554_v17 }
 0x10b   : > { %807 = vmatmul.f32.gmra.mxu3 %v555_v18 }
 0x10c   : > { %646 = vmatmul.f32.gmra.mxu0 %v522_v19  ;;  %759 = vmatmul.f32.gmra.mxu1 %v523_v20  ;;  %v471_v20 = vld [vmem:[#allocation2 + $0x68] sm:$0xff] }
 0x112   : > { %697 = vmatmul.f32.gmra.mxu2 %v556_v21 }
 0x113   : > { %810 = vmatmul.f32.gmra.mxu3 %v557_v22 }
 0x114   : > { %649 = vmatmul.f32.gmra.mxu0 %v524_v23  ;;  %762 = vmatmul.f32.gmra.mxu1 %v525_v24 }
 0x11a   : > { %700 = vmatmul.f32.gmra.mxu2 %v558_v25  ;;  %v487_v25 = vld [vmem:[#allocation2 + $0x90] sm:$0xff] }
 0x11b   : > { %813 = vmatmul.f32.gmra.mxu3 %v559_v26 }
 0x11c   : > { %652 = vmatmul.f32.gmra.mxu0 %v526_v27  ;;  %765 = vmatmul.f32.gmra.mxu1 %v527_v28 }
 0x122   : > { %703 = vmatmul.f32.gmra.mxu2 %v560_v29 }
 0x123   : > { %816 = vmatmul.f32.gmra.mxu3 %v561_v30  ;;  %v472_v30 = vld [vmem:[#allocation2 + $0x30] sm:$0xff] }
 0x124   : > { %655 = vmatmul.f32.gmra.mxu0 %v528_v31  ;;  %768 = vmatmul.f32.gmra.mxu1 %v529_v32 }
 0x129   : > { %v611_v33 = vpop.f32.mrf.mxu0  ;;  %v724_v35 = vpop.f32.mrf.mxu1 }
 0x12a   : > { %v725_v36 = vadd.f32 %v724_v35, %v611_v33  ;;  %v488_v35 = vld [vmem:[#allocation2 + $0x70] sm:$0xff] }
 0x12c   : > { %v820_v37 = vadd.f32 %v725_v36, %v466_v34 }
 0x12d   : > { %v659_v38 = vpop.f32.mrf.mxu2 }
 0x12e   : > { %v772_v40 = vpop.f32.mrf.mxu3  ;;  %852 = vst [vmem:[#allocation2 + $0xb0] sm:$0xff] %v820_v37 }
 0x12f   : > { %v773_v41 = vadd.f32 %v772_v40, %v659_v38  ;;  %v473_v40 = vld [vmem:[#allocation2 + $0x48] sm:$0xff] }
 0x131   : > { %v836_v42 = vadd.f32 %v773_v41, %v482_v39  ;;  %v614_v43 = vpop.f32.mrf.mxu0  ;;  %v727_v45 = vpop.f32.mrf.mxu1 }
 0x132   : > { %v728_v46 = vadd.f32 %v727_v45, %v614_v43  ;;  %v489_v45 = vld [vmem:[#allocation2 + $0xc0] sm:$0xff] }
 0x133   : > { %868 = vst [vmem:[#allocation2 + $0x38] sm:$0xff] %v836_v42 }
 0x134   : > { %v821_v47 = vadd.f32 %v728_v46, %v467_v44 }
 0x135   : > { %v662_v48 = vpop.f32.mrf.mxu2 }
 0x136   : > { %v775_v50 = vpop.f32.mrf.mxu3  ;;  %853 = vst [vmem:[#allocation2] sm:$0xff] %v821_v47 }
 0x137   : > { %v776_v51 = vadd.f32 %v775_v50, %v662_v48  ;;  %v474_v50 = vld [vmem:[#allocation2 + $0x80] sm:$0xff] }
 0x139   : > { %v837_v52 = vadd.f32 %v776_v51, %v483_v49  ;;  %v617_v53 = vpop.f32.mrf.mxu0  ;;  %v730_v55 = vpop.f32.mrf.mxu1 }
 0x13a   : > { %v731_v56 = vadd.f32 %v730_v55, %v617_v53  ;;  %v490_v55 = vld [vmem:[#allocation2 + $0xa8] sm:$0xff] }
 0x13b   : > { %869 = vst [vmem:[#allocation2 + $0x58] sm:$0xff] %v837_v52 }
 0x13c   : > { %v822_v57 = vadd.f32 %v731_v56, %v468_v54 }
 0x13d   : > { %v665_v58 = vpop.f32.mrf.mxu2 }
 0x13e   : > { %v778_v60 = vpop.f32.mrf.mxu3  ;;  %854 = vst [vmem:[#allocation2 + $0xd8] sm:$0xff] %v822_v57 }
 0x13f   : > { %v779_v61 = vadd.f32 %v778_v60, %v665_v58  ;;  %v475_v60 = vld [vmem:[#allocation2 + $0x88] sm:$0xff] }
 0x141   : > { %v838_v62 = vadd.f32 %v779_v61, %v484_v59  ;;  %v620_v63 = vpop.f32.mrf.mxu0  ;;  %v733_v1 = vpop.f32.mrf.mxu1 }
 0x142   : > { %v734_v2 = vadd.f32 %v733_v1, %v620_v63  ;;  %v491_v1 = vld [vmem:[#allocation2 + $0xd0] sm:$0xff] }
 0x143   : > { %870 = vst [vmem:[#allocation2 + $0x40] sm:$0xff] %v838_v62 }
 0x144   : > { %v823_v3 = vadd.f32 %v734_v2, %v469_v0 }
 0x145   : > { %v668_v4 = vpop.f32.mrf.mxu2 }
 0x146   : > { %v781_v6 = vpop.f32.mrf.mxu3  ;;  %855 = vst [vmem:[#allocation2 + $0x18] sm:$0xff] %v823_v3 }
 0x147   : > { %v782_v7 = vadd.f32 %v781_v6, %v668_v4  ;;  %v476_v6 = vld [vmem:[#allocation2 + $0xe8] sm:$0xff] }
 0x149   : > { %v839_v8 = vadd.f32 %v782_v7, %v485_v5  ;;  %v623_v9 = vpop.f32.mrf.mxu0  ;;  %v736_v11 = vpop.f32.mrf.mxu1 }
 0x14a   : > { %v737_v12 = vadd.f32 %v736_v11, %v623_v9  ;;  %v492_v11 = vld [vmem:[#allocation2 + $0x10] sm:$0xff] }
 0x14b   : > { %871 = vst [vmem:[#allocation2 + $0xc8] sm:$0xff] %v839_v8 }
 0x14c   : > { %v824_v13 = vadd.f32 %v737_v12, %v470_v10 }
 0x14d   : > { %v671_v14 = vpop.f32.mrf.mxu2 }
 0x14e   : > { %v784_v16 = vpop.f32.mrf.mxu3  ;;  %856 = vst [vmem:[#allocation2 + $0x50] sm:$0xff] %v824_v13 }
 0x14f   : > { %v785_v17 = vadd.f32 %v784_v16, %v671_v14  ;;  %v477_v16 = vld [vmem:[#allocation2 + $0xb8] sm:$0xff] }
 0x151   : > { %v840_v18 = vadd.f32 %v785_v17, %v486_v15  ;;  %v626_v19 = vpop.f32.mrf.mxu0  ;;  %v739_v21 = vpop.f32.mrf.mxu1 }
 0x152   : > { %v740_v22 = vadd.f32 %v739_v21, %v626_v19  ;;  %v493_v21 = vld [vmem:[#allocation2 + $0x28] sm:$0xff] }
 0x153   : > { %872 = vst [vmem:[#allocation2 + $0xe0] sm:$0xff] %v840_v18 }
 0x154   : > { %v825_v23 = vadd.f32 %v740_v22, %v471_v20 }
 0x155   : > { %v674_v24 = vpop.f32.mrf.mxu2 }
 0x156   : > { %v787_v26 = vpop.f32.mrf.mxu3  ;;  %857 = vst [vmem:[#allocation2 + $0x68] sm:$0xff] %v825_v23 }
 0x157   : > { %v788_v27 = vadd.f32 %v787_v26, %v674_v24  ;;  %v478_v26 = vld [vmem:[#allocation2 + $0x60] sm:$0xff] }
 0x159   : > { %v841_v28 = vadd.f32 %v788_v27, %v487_v25  ;;  %v629_v29 = vpop.f32.mrf.mxu0  ;;  %v742_v31 = vpop.f32.mrf.mxu1 }
 0x15a   : > { %v743_v32 = vadd.f32 %v742_v31, %v629_v29  ;;  %v494_v31 = vld [vmem:[#allocation2 + $0xa0] sm:$0xff] }
 0x15b   : > { %873 = vst [vmem:[#allocation2 + $0x90] sm:$0xff] %v841_v28 }
 0x15c   : > { %v826_v33 = vadd.f32 %v743_v32, %v472_v30 }
 0x15d   : > { %v677_v34 = vpop.f32.mrf.mxu2 }
 0x15e   : > { %v790_v36 = vpop.f32.mrf.mxu3  ;;  %858 = vst [vmem:[#allocation2 + $0x30] sm:$0xff] %v826_v33 }
 0x15f   : > { %v791_v37 = vadd.f32 %v790_v36, %v677_v34  ;;  %v479_v36 = vld [vmem:[#allocation2 + $0xf0] sm:$0xff] }
 0x161   : > { %v842_v38 = vadd.f32 %v791_v37, %v488_v35  ;;  %v632_v39 = vpop.f32.mrf.mxu0  ;;  %v745_v41 = vpop.f32.mrf.mxu1 }
 0x162   : > { %v746_v42 = vadd.f32 %v745_v41, %v632_v39  ;;  %v495_v41 = vld [vmem:[#allocation2 + $0xf8] sm:$0xff] }
 0x163   : > { %874 = vst [vmem:[#allocation2 + $0x70] sm:$0xff] %v842_v38 }
 0x164   : > { %v827_v43 = vadd.f32 %v746_v42, %v473_v40 }
 0x165   : > { %v680_v44 = vpop.f32.mrf.mxu2 }
 0x166   : > { %v793_v46 = vpop.f32.mrf.mxu3  ;;  %859 = vst [vmem:[#allocation2 + $0x48] sm:$0xff] %v827_v43 }
 0x167   : > { %v794_v47 = vadd.f32 %v793_v46, %v680_v44  ;;  %v480_v46 = vld [vmem:[#allocation2 + $0x8] sm:$0xff] }
 0x169   : > { %v843_v48 = vadd.f32 %v794_v47, %v489_v45  ;;  %v635_v49 = vpop.f32.mrf.mxu0  ;;  %v748_v51 = vpop.f32.mrf.mxu1 }
 0x16a   : > { %v749_v52 = vadd.f32 %v748_v51, %v635_v49  ;;  %v496_v51 = vld [vmem:[#allocation2 + $0x20] sm:$0xff] }
 0x16b   : > { %875 = vst [vmem:[#allocation2 + $0xc0] sm:$0xff] %v843_v48 }
 0x16c   : > { %v828_v53 = vadd.f32 %v749_v52, %v474_v50 }
 0x16d   : > { %v683_v54 = vpop.f32.mrf.mxu2 }
 0x16e   : > { %v796_v56 = vpop.f32.mrf.mxu3  ;;  %860 = vst [vmem:[#allocation2 + $0x80] sm:$0xff] %v828_v53 }
 0x16f   : > { %v797_v57 = vadd.f32 %v796_v56, %v683_v54  ;;  %v481_v56 = vld [vmem:[#allocation2 + $0x78] sm:$0xff] }
 0x171   : > { %v844_v58 = vadd.f32 %v797_v57, %v490_v55  ;;  %v638_v59 = vpop.f32.mrf.mxu0  ;;  %v751_v61 = vpop.f32.mrf.mxu1 }
 0x172   : > { %v752_v62 = vadd.f32 %v751_v61, %v638_v59  ;;  %v497_v61 = vld [vmem:[#allocation2 + $0x98] sm:$0xff] }
 0x173   : > { %876 = vst [vmem:[#allocation2 + $0xa8] sm:$0xff] %v844_v58 }
 0x174   : > { %v829_v63 = vadd.f32 %v752_v62, %v475_v60 }
 0x175   : > { %v686_v0 = vpop.f32.mrf.mxu2 }
 0x176   : > { %v799_v2 = vpop.f32.mrf.mxu3  ;;  %861 = vst [vmem:[#allocation2 + $0x88] sm:$0xff] %v829_v63 }
 0x177   : > { %v800_v3 = vadd.f32 %v799_v2, %v686_v0 }
 0x179   : > { %v845_v4 = vadd.f32 %v800_v3, %v491_v1  ;;  %v641_v5 = vpop.f32.mrf.mxu0  ;;  %v754_v7 = vpop.f32.mrf.mxu1 }
 0x17a   : > { %v755_v8 = vadd.f32 %v754_v7, %v641_v5 }
 0x17b   : > { %877 = vst [vmem:[#allocation2 + $0xd0] sm:$0xff] %v845_v4 }
 0x17c   : > { %v830_v9 = vadd.f32 %v755_v8, %v476_v6 }
 0x17d   : > { %v689_v10 = vpop.f32.mrf.mxu2 }
 0x17e   : > { %v802_v12 = vpop.f32.mrf.mxu3  ;;  %862 = vst [vmem:[#allocation2 + $0xe8] sm:$0xff] %v830_v9 }
 0x17f   : > { %v803_v13 = vadd.f32 %v802_v12, %v689_v10 }
 0x181   : > { %v846_v14 = vadd.f32 %v803_v13, %v492_v11  ;;  %v644_v15 = vpop.f32.mrf.mxu0  ;;  %v757_v17 = vpop.f32.mrf.mxu1 }
 0x182   : > { %v758_v18 = vadd.f32 %v757_v17, %v644_v15 }
 0x183   : > { %878 = vst [vmem:[#allocation2 + $0x10] sm:$0xff] %v846_v14 }
 0x184   : > { %v831_v19 = vadd.f32 %v758_v18, %v477_v16 }
 0x185   : > { %v692_v20 = vpop.f32.mrf.mxu2 }
 0x186   : > { %v805_v22 = vpop.f32.mrf.mxu3  ;;  %863 = vst [vmem:[#allocation2 + $0xb8] sm:$0xff] %v831_v19 }
 0x187   : > { %v806_v23 = vadd.f32 %v805_v22, %v692_v20 }
 0x189   : > { %v847_v24 = vadd.f32 %v806_v23, %v493_v21  ;;  %v647_v25 = vpop.f32.mrf.mxu0  ;;  %v760_v27 = vpop.f32.mrf.mxu1 }
 0x18a   : > { %v761_v28 = vadd.f32 %v760_v27, %v647_v25 }
 0x18b   : > { %879 = vst [vmem:[#allocation2 + $0x28] sm:$0xff] %v847_v24 }
 0x18c   : > { %v832_v29 = vadd.f32 %v761_v28, %v478_v26 }
 0x18d   : > { %v695_v30 = vpop.f32.mrf.mxu2 }
 0x18e   : > { %v808_v32 = vpop.f32.mrf.mxu3  ;;  %864 = vst [vmem:[#allocation2 + $0x60] sm:$0xff] %v832_v29 }
 0x18f   : > { %v809_v33 = vadd.f32 %v808_v32, %v695_v30 }
 0x191   : > { %v848_v34 = vadd.f32 %v809_v33, %v494_v31  ;;  %v650_v35 = vpop.f32.mrf.mxu0  ;;  %v763_v37 = vpop.f32.mrf.mxu1 }
 0x192   : > { %v764_v38 = vadd.f32 %v763_v37, %v650_v35 }
 0x193   : > { %880 = vst [vmem:[#allocation2 + $0xa0] sm:$0xff] %v848_v34 }
 0x194   : > { %v833_v39 = vadd.f32 %v764_v38, %v479_v36 }
 0x195   : > { %v698_v40 = vpop.f32.mrf.mxu2 }
 0x196   : > { %v811_v42 = vpop.f32.mrf.mxu3  ;;  %865 = vst [vmem:[#allocation2 + $0xf0] sm:$0xff] %v833_v39 }
 0x197   : > { %v812_v43 = vadd.f32 %v811_v42, %v698_v40 }
 0x199   : > { %v849_v44 = vadd.f32 %v812_v43, %v495_v41  ;;  %v653_v45 = vpop.f32.mrf.mxu0  ;;  %v766_v47 = vpop.f32.mrf.mxu1 }
 0x19a   : > { %v767_v48 = vadd.f32 %v766_v47, %v653_v45 }
 0x19b   : > { %881 = vst [vmem:[#allocation2 + $0xf8] sm:$0xff] %v849_v44 }
 0x19c   : > { %v834_v49 = vadd.f32 %v767_v48, %v480_v46 }
 0x19d   : > { %v701_v50 = vpop.f32.mrf.mxu2 }
 0x19e   : > { %v814_v52 = vpop.f32.mrf.mxu3  ;;  %866 = vst [vmem:[#allocation2 + $0x8] sm:$0xff] %v834_v49 }
 0x19f   : > { %v815_v53 = vadd.f32 %v814_v52, %v701_v50 }
 0x1a1   : > { %v850_v54 = vadd.f32 %v815_v53, %v496_v51  ;;  %v656_v55 = vpop.f32.mrf.mxu0  ;;  %v769_v57 = vpop.f32.mrf.mxu1 }
 0x1a2   : > { %v770_v58 = vadd.f32 %v769_v57, %v656_v55 }
 0x1a3   : > { %882 = vst [vmem:[#allocation2 + $0x20] sm:$0xff] %v850_v54 }
 0x1a4   : > { %v835_v59 = vadd.f32 %v770_v58, %v481_v56 }
 0x1a5   : > { %v704_v60 = vpop.f32.mrf.mxu2 }
 0x1a6   : > { %v817_v62 = vpop.f32.mrf.mxu3  ;;  %867 = vst [vmem:[#allocation2 + $0x78] sm:$0xff] %v835_v59 }
 0x1a7   : > { %v818_v63 = vadd.f32 %v817_v62, %v704_v60  ;;  %887 = sbr.rel (%p1501_p13) target bundleno = 638 (0x27e), region = 67 }
 0x1a9   : > { %v851_v0 = vadd.f32 %v818_v63, %v497_v61 }
 0x1ab   : > { %883 = vst [vmem:[#allocation2 + $0x98] sm:$0xff] %v851_v0 }
 0x1ac   : > { %v924_v1 = vld [vmem:[%s1891_s10 + $0x20] sm:$0xff]  ;;  %v922_v2 = vld [vmem:[%s1891_s10 + $0x10] sm:$0xff]  ;;  %v1655_v4 = vmov 0   ;;  %v925_v5 = vld [vmem:[%s1891_s10 + $0x28] sm:$0xff] }
 0x1ad   : > { %v920_v3 = vld [vmem:[%s1891_s10] sm:$0xff]  ;;  %1597 = vset.pattern.permute.xlu2 %v1655_v4  ;;  %1596 = vset.pattern.permute.xlu1 %v1655_v4  ;;  %v923_v6 = vld [vmem:[%s1891_s10 + $0x18] sm:$0xff]  ;;  %v921_v7 = vld [vmem:[%s1891_s10 + $0x8] sm:$0xff] }
 0x1ae   : > { %1595 = vset.pattern.permute.xlu0 %v1655_v4  ;;  %1006 = vperm.xlu2 %1597, %v924_v1   ;;  %v928_v8 = vld [vmem:[%s1891_s10 + $0x40] sm:$0xff]  ;;  %v927_v9 = vld [vmem:[%s1891_s10 + $0x38] sm:$0xff]  ;;  %v926_v10 = vld [vmem:[%s1891_s10 + $0x30] sm:$0xff] }
 0x1af   : > { %996 = vperm.xlu1 %1596, %v922_v2   ;;  %986 = vperm.xlu0 %1595, %v920_v3   ;;  %v931_v11 = vld [vmem:[%s1891_s10 + $0x58] sm:$0xff]  ;;  %v930_v12 = vld [vmem:[%s1891_s10 + $0x50] sm:$0xff]  ;;  %v929_v13 = vld [vmem:[%s1891_s10 + $0x48] sm:$0xff] }
 0x1b0   : > { %v934_v14 = vld [vmem:[%s1891_s10 + $0x70] sm:$0xff]  ;;  %v933_v15 = vld [vmem:[%s1891_s10 + $0x68] sm:$0xff]  ;;  %v932_v16 = vld [vmem:[%s1891_s10 + $0x60] sm:$0xff] }
 0x1b1   : > { %v937_v17 = vld [vmem:[%s1891_s10 + $0x88] sm:$0xff]  ;;  %v936_v18 = vld [vmem:[%s1891_s10 + $0x80] sm:$0xff]  ;;  %v935_v19 = vld [vmem:[%s1891_s10 + $0x78] sm:$0xff] }
 0x1b2   : > { %v940_v20 = vld [vmem:[%s1891_s10 + $0xa0] sm:$0xff]  ;;  %v939_v21 = vld [vmem:[%s1891_s10 + $0x98] sm:$0xff]  ;;  %v938_v22 = vld [vmem:[%s1891_s10 + $0x90] sm:$0xff] }
 0x1b3   : > { %v943_v23 = vld [vmem:[%s1891_s10 + $0xb8] sm:$0xff]  ;;  %v942_v24 = vld [vmem:[%s1891_s10 + $0xb0] sm:$0xff]  ;;  %v941_v25 = vld [vmem:[%s1891_s10 + $0xa8] sm:$0xff] }
 0x1b4   : > { %v946_v26 = vld [vmem:[%s1891_s10 + $0xd0] sm:$0xff]  ;;  %v945_v27 = vld [vmem:[%s1891_s10 + $0xc8] sm:$0xff]  ;;  %v944_v28 = vld [vmem:[%s1891_s10 + $0xc0] sm:$0xff] }
 0x1b5   : > { %v949_v29 = vld [vmem:[%s1891_s10 + $0xe8] sm:$0xff]  ;;  %v948_v30 = vld [vmem:[%s1891_s10 + $0xe0] sm:$0xff]  ;;  %v947_v31 = vld [vmem:[%s1891_s10 + $0xd8] sm:$0xff] }
 0x1b6   : > { %1011 = vperm.xlu2 %1597, %v925_v5   ;;  %v951_v32 = vld [vmem:[%s1891_s10 + $0xf8] sm:$0xff]  ;;  %v950_v33 = vld [vmem:[%s1891_s10 + $0xf0] sm:$0xff]  ;;  %v892_v34 = vld [vmem:[%s1886_s8 + $0x20] sm:$0xff] }
 0x1b7   : > { %1001 = vperm.xlu1 %1596, %v923_v6   ;;  %991 = vperm.xlu0 %1595, %v921_v7   ;;  %v956_v35 = vld [vmem:[#allocation2 + $0x50] sm:$0xff]  ;;  %v1276_v40 = vmul.f32 0.6666667, %v892_v34  ;;  %v893_v41 = vld [vmem:[%s1886_s8 + $0x28] sm:$0xff]  ;;  %v896_v50 = vld [vmem:[%s1886_s8 + $0x40] sm:$0xff] }
 0x1b8   : > { %v957_v43 = vld [vmem:[#allocation2 + $0x68] sm:$0xff]  ;;  %v1277_v49 = vmul.f32 0.6666667, %v893_v41  ;;  %v960_v52 = vld [vmem:[#allocation2 + $0x80] sm:$0xff]  ;;  %v1280_v58 = vmul.f32 0.6666667, %v896_v50 }
 0x1b9   : > { %v899_v59 = vld [vmem:[%s1886_s8 + $0x58] sm:$0xff]  ;;  %v890_v61 = vld [vmem:[%s1886_s8 + $0x10] sm:$0xff]  ;;  %v888_v62 = vld [vmem:[%s1886_s8] sm:$0xff] }
 0x1ba   : > { %v963_v63 = vld [vmem:[#allocation2 + $0xb8] sm:$0xff]  ;;  %v952_v5 = vld [vmem:[#allocation2 + $0xb0] sm:$0xff] }
 0x1bb   : > { %v954_v3 = vld [vmem:[#allocation2 + $0xd8] sm:$0xff] }
 0x1be   : > { %1026 = vperm.xlu2 %1597, %v928_v8  }
 0x1bf   : > { %1021 = vperm.xlu1 %1596, %v927_v9   ;;  %1016 = vperm.xlu0 %1595, %v926_v10  }
 0x1c6   : > { %1041 = vperm.xlu2 %1597, %v931_v11  }
 0x1c7   : > { %1036 = vperm.xlu1 %1596, %v930_v12   ;;  %1031 = vperm.xlu0 %1595, %v929_v13   ;;  %v1283_v13 = vmul.f32 0.6666667, %v899_v59 }
 0x1ce   : > { %1056 = vperm.xlu2 %1597, %v934_v14  }
 0x1cf   : > { %1051 = vperm.xlu1 %1596, %v933_v15   ;;  %1046 = vperm.xlu0 %1595, %v932_v16   ;;  %v1274_v15 = vmul.f32 0.6666667, %v890_v61 }
 0x1d6   : > { %1071 = vperm.xlu2 %1597, %v937_v17   ;;  %v1272_v17 = vmul.f32 0.6666667, %v888_v62 }
 0x1d7   : > { %1066 = vperm.xlu1 %1596, %v936_v18   ;;  %1061 = vperm.xlu0 %1595, %v935_v19   ;;  %v902_v18 = vld [vmem:[%s1886_s8 + $0x70] sm:$0xff] }
 0x1de   : > { %1086 = vperm.xlu2 %1597, %v940_v20   ;;  %v891_v20 = vld [vmem:[%s1886_s8 + $0x18] sm:$0xff] }
 0x1df   : > { %1081 = vperm.xlu1 %1596, %v939_v21   ;;  %1076 = vperm.xlu0 %1595, %v938_v22   ;;  %v889_v21 = vld [vmem:[%s1886_s8 + $0x8] sm:$0xff] }
 0x1e6   : > { %1101 = vperm.xlu2 %1597, %v943_v23  }
 0x1e7   : > { %1096 = vperm.xlu1 %1596, %v942_v24   ;;  %1091 = vperm.xlu0 %1595, %v941_v25   ;;  %v966_v24 = vld [vmem:[#allocation2 + $0x8] sm:$0xff] }
 0x1ee   : > { %1116 = vperm.xlu2 %1597, %v946_v26  }
 0x1ef   : > { %1111 = vperm.xlu1 %1596, %v945_v27   ;;  %1106 = vperm.xlu0 %1595, %v944_v28   ;;  %v955_v28 = vld [vmem:[#allocation2 + $0x18] sm:$0xff] }
 0x1f6   : > { %1131 = vperm.xlu2 %1597, %v949_v29  }
 0x1f7   : > { %1126 = vperm.xlu1 %1596, %v948_v30   ;;  %1121 = vperm.xlu0 %1595, %v947_v31   ;;  %v953_v30 = vld [vmem:[#allocation2] sm:$0xff] }
 0x1ff   : > { %1141 = vperm.xlu1 %1596, %v951_v32   ;;  %1136 = vperm.xlu0 %1595, %v950_v33  }
 0x208   : > { %v1007_v36 = vpop.permute.xlu2 %1006 }
 0x209   : > { %v1148_v37 = vmul.f32 %v1007_v36, %v892_v34 }
 0x20b   : > { %v1180_v38 = vadd.f32 %v1148_v37, %v956_v35 }
 0x20d   : > { %v1212_v39 = vmul.f32 %v1180_v38, %v1007_v36 }
 0x20f   : > { %v1244_v42 = vmul.f32 0.33333334, %v1212_v39 }
 0x210   : > { %v1012_v44 = vpop.permute.xlu2 %1011 }
 0x211   : > { %v1308_v45 = vadd.f32 %v1276_v40, %v1244_v42  ;;  %v1149_v46 = vmul.f32 %v1012_v44, %v893_v41  ;;  %v1286_v40 = vmul.f32 0.6666667, %v902_v18  ;;  %v1275_v42 = vmul.f32 0.6666667, %v891_v20 }
 0x213   : > { %1340 = vst [vmem:[%s1896_s12 + $0x20] sm:$0xff] %v1308_v45  ;;  %v1181_v47 = vadd.f32 %v1149_v46, %v957_v43  ;;  %v905_v45 = vld [vmem:[%s1886_s8 + $0x88] sm:$0xff] }
 0x215   : > { %v1213_v48 = vmul.f32 %v1181_v47, %v1012_v44  ;;  %v1273_v44 = vmul.f32 0.6666667, %v889_v21  ;;  %v895_v47 = vld [vmem:[%s1886_s8 + $0x38] sm:$0xff] }
 0x217   : > { %v1245_v51 = vmul.f32 0.33333334, %v1213_v48  ;;  %v894_v48 = vld [vmem:[%s1886_s8 + $0x30] sm:$0xff] }
 0x218   : > { %v1027_v53 = vpop.permute.xlu2 %1026 }
 0x219   : > { %v1309_v54 = vadd.f32 %v1277_v49, %v1245_v51  ;;  %v1152_v55 = vmul.f32 %v1027_v53, %v896_v50  ;;  %v969_v51 = vld [vmem:[#allocation2 + $0x58] sm:$0xff] }
 0x21b   : > { %1341 = vst [vmem:[%s1896_s12 + $0x28] sm:$0xff] %v1309_v54  ;;  %v1184_v56 = vadd.f32 %v1152_v55, %v960_v52  ;;  %v959_v55 = vld [vmem:[#allocation2 + $0x48] sm:$0xff] }
 0x21d   : > { %v1216_v57 = vmul.f32 %v1184_v56, %v1027_v53 }
 0x21f   : > { %v1248_v60 = vmul.f32 0.33333334, %v1216_v57  ;;  %v958_v57 = vld [vmem:[#allocation2 + $0x30] sm:$0xff] }
 0x220   : > { %v1042_v0 = vpop.permute.xlu2 %1041 }
 0x221   : > { %v1312_v1 = vadd.f32 %v1280_v58, %v1248_v60  ;;  %v1155_v2 = vmul.f32 %v1042_v0, %v899_v59  ;;  %v997_v4 = vpop.permute.xlu1 %996  ;;  %v987_v6 = vpop.permute.xlu0 %986 }
 0x222   : > { %v1146_v7 = vmul.f32 %v997_v4, %v890_v61  ;;  %v1144_v8 = vmul.f32 %v987_v6, %v888_v62 }
 0x223   : > { %1344 = vst [vmem:[%s1896_s12 + $0x40] sm:$0xff] %v1312_v1  ;;  %v1187_v9 = vadd.f32 %v1155_v2, %v963_v63 }
 0x224   : > { %v1178_v10 = vadd.f32 %v1146_v7, %v954_v3  ;;  %v1176_v11 = vadd.f32 %v1144_v8, %v952_v5  ;;  %v1289_v3 = vmul.f32 0.6666667, %v905_v45  ;;  %v1279_v5 = vmul.f32 0.6666667, %v895_v47  ;;  %v908_v8 = vld [vmem:[%s1886_s8 + $0xa0] sm:$0xff] }
 0x225   : > { %v1219_v12 = vmul.f32 %v1187_v9, %v1042_v0  ;;  %v1278_v7 = vmul.f32 0.6666667, %v894_v48 }
 0x226   : > { %v1210_v14 = vmul.f32 %v1178_v10, %v997_v4  ;;  %v1208_v16 = vmul.f32 %v1176_v11, %v987_v6  ;;  %v898_v10 = vld [vmem:[%s1886_s8 + $0x50] sm:$0xff]  ;;  %v897_v11 = vld [vmem:[%s1886_s8 + $0x48] sm:$0xff] }
 0x227   : > { %v1251_v19 = vmul.f32 0.33333334, %v1219_v12 }
 0x228   : > { %v1242_v22 = vmul.f32 0.33333334, %v1210_v14  ;;  %v1240_v23 = vmul.f32 0.33333334, %v1208_v16  ;;  %v1057_v25 = vpop.permute.xlu2 %1056  ;;  %v972_v14 = vld [vmem:[#allocation2 + $0xe0] sm:$0xff] }
 0x229   : > { %v1315_v26 = vadd.f32 %v1283_v13, %v1251_v19  ;;  %v1158_v27 = vmul.f32 %v1057_v25, %v902_v18  ;;  %v1002_v29 = vpop.permute.xlu1 %1001  ;;  %v992_v31 = vpop.permute.xlu0 %991  ;;  %v962_v18 = vld [vmem:[#allocation2 + $0xe8] sm:$0xff] }
 0x22a   : > { %v1306_v32 = vadd.f32 %v1274_v15, %v1242_v22  ;;  %v1304_v33 = vadd.f32 %v1272_v17, %v1240_v23  ;;  %v1147_v34 = vmul.f32 %v1002_v29, %v891_v20  ;;  %v1145_v35 = vmul.f32 %v992_v31, %v889_v21  ;;  %v961_v20 = vld [vmem:[#allocation2 + $0x88] sm:$0xff] }
 0x22b   : > { %1347 = vst [vmem:[%s1896_s12 + $0x58] sm:$0xff] %v1315_v26  ;;  %v1190_v36 = vadd.f32 %v1158_v27, %v966_v24 }
 0x22c   : > { %1338 = vst [vmem:[%s1896_s12 + $0x10] sm:$0xff] %v1306_v32  ;;  %v1179_v37 = vadd.f32 %v1147_v34, %v955_v28  ;;  %v1177_v38 = vadd.f32 %v1145_v35, %v953_v30  ;;  %v1292_v30 = vmul.f32 0.6666667, %v908_v8  ;;  %v1282_v32 = vmul.f32 0.6666667, %v898_v10  ;;  %v911_v35 = vld [vmem:[%s1886_s8 + $0xb8] sm:$0xff] }
 0x22d   : > { %1336 = vst [vmem:[%s1896_s12] sm:$0xff] %v1304_v33  ;;  %v1222_v39 = vmul.f32 %v1190_v36, %v1057_v25  ;;  %v1281_v34 = vmul.f32 0.6666667, %v897_v11 }
 0x22e   : > { %v1211_v41 = vmul.f32 %v1179_v37, %v1002_v29  ;;  %v1209_v43 = vmul.f32 %v1177_v38, %v992_v31  ;;  %v901_v37 = vld [vmem:[%s1886_s8 + $0x68] sm:$0xff]  ;;  %v900_v38 = vld [vmem:[%s1886_s8 + $0x60] sm:$0xff] }
 0x22f   : > { %v1254_v46 = vmul.f32 0.33333334, %v1222_v39 }
 0x230   : > { %v1243_v49 = vmul.f32 0.33333334, %v1211_v41  ;;  %v1241_v50 = vmul.f32 0.33333334, %v1209_v43  ;;  %v1072_v52 = vpop.permute.xlu2 %1071  ;;  %v975_v41 = vld [vmem:[#allocation2 + $0xc0] sm:$0xff] }
 0x231   : > { %v1318_v53 = vadd.f32 %v1286_v40, %v1254_v46  ;;  %v1161_v54 = vmul.f32 %v1072_v52, %v905_v45  ;;  %v1022_v56 = vpop.permute.xlu1 %1021  ;;  %v1017_v58 = vpop.permute.xlu0 %1016  ;;  %v965_v45 = vld [vmem:[#allocation2 + $0xf0] sm:$0xff] }
 0x232   : > { %v1307_v59 = vadd.f32 %v1275_v42, %v1243_v49  ;;  %v1305_v60 = vadd.f32 %v1273_v44, %v1241_v50  ;;  %v1151_v61 = vmul.f32 %v1022_v56, %v895_v47  ;;  %v1150_v62 = vmul.f32 %v1017_v58, %v894_v48  ;;  %v964_v47 = vld [vmem:[#allocation2 + $0x60] sm:$0xff] }
 0x233   : > { %1350 = vst [vmem:[%s1896_s12 + $0x70] sm:$0xff] %v1318_v53  ;;  %v1193_v63 = vadd.f32 %v1161_v54, %v969_v51 }
 0x234   : > { %1339 = vst [vmem:[%s1896_s12 + $0x18] sm:$0xff] %v1307_v59  ;;  %v1183_v0 = vadd.f32 %v1151_v61, %v959_v55  ;;  %v1182_v1 = vadd.f32 %v1150_v62, %v958_v57  ;;  %v1295_v57 = vmul.f32 0.6666667, %v911_v35  ;;  %v1285_v59 = vmul.f32 0.6666667, %v901_v37  ;;  %v914_v62 = vld [vmem:[%s1886_s8 + $0xd0] sm:$0xff] }
 0x235   : > { %1337 = vst [vmem:[%s1896_s12 + $0x8] sm:$0xff] %v1305_v60  ;;  %v1225_v2 = vmul.f32 %v1193_v63, %v1072_v52  ;;  %v1284_v61 = vmul.f32 0.6666667, %v900_v38 }
 0x236   : > { %v1215_v4 = vmul.f32 %v1183_v0, %v1022_v56  ;;  %v1214_v6 = vmul.f32 %v1182_v1, %v1017_v58  ;;  %v904_v0 = vld [vmem:[%s1886_s8 + $0x80] sm:$0xff]  ;;  %v903_v1 = vld [vmem:[%s1886_s8 + $0x78] sm:$0xff] }
 0x237   : > { %v1257_v9 = vmul.f32 0.33333334, %v1225_v2 }
 0x238   : > { %v1247_v12 = vmul.f32 0.33333334, %v1215_v4  ;;  %v1246_v13 = vmul.f32 0.33333334, %v1214_v6  ;;  %v1087_v15 = vpop.permute.xlu2 %1086  ;;  %v978_v4 = vld [vmem:[#allocation2 + $0x10] sm:$0xff] }
 0x239   : > { %v1321_v16 = vadd.f32 %v1289_v3, %v1257_v9  ;;  %v1164_v17 = vmul.f32 %v1087_v15, %v908_v8  ;;  %v1037_v19 = vpop.permute.xlu1 %1036  ;;  %v1032_v21 = vpop.permute.xlu0 %1031  ;;  %v968_v8 = vld [vmem:[#allocation2 + $0x38] sm:$0xff] }
 0x23a   : > { %v1311_v22 = vadd.f32 %v1279_v5, %v1247_v12  ;;  %v1310_v23 = vadd.f32 %v1278_v7, %v1246_v13  ;;  %v1154_v24 = vmul.f32 %v1037_v19, %v898_v10  ;;  %v1153_v25 = vmul.f32 %v1032_v21, %v897_v11  ;;  %v967_v10 = vld [vmem:[#allocation2 + $0x78] sm:$0xff] }
 0x23b   : > { %1353 = vst [vmem:[%s1896_s12 + $0x88] sm:$0xff] %v1321_v16  ;;  %v1196_v26 = vadd.f32 %v1164_v17, %v972_v14 }
 0x23c   : > { %1343 = vst [vmem:[%s1896_s12 + $0x38] sm:$0xff] %v1311_v22  ;;  %v1186_v27 = vadd.f32 %v1154_v24, %v962_v18  ;;  %v1185_v28 = vadd.f32 %v1153_v25, %v961_v20  ;;  %v1298_v20 = vmul.f32 0.6666667, %v914_v62  ;;  %v1288_v22 = vmul.f32 0.6666667, %v904_v0  ;;  %v917_v25 = vld [vmem:[%s1886_s8 + $0xe8] sm:$0xff] }
 0x23d   : > { %1342 = vst [vmem:[%s1896_s12 + $0x30] sm:$0xff] %v1310_v23  ;;  %v1228_v29 = vmul.f32 %v1196_v26, %v1087_v15  ;;  %v1287_v24 = vmul.f32 0.6666667, %v903_v1 }
 0x23e   : > { %v1218_v31 = vmul.f32 %v1186_v27, %v1037_v19  ;;  %v1217_v33 = vmul.f32 %v1185_v28, %v1032_v21  ;;  %v907_v27 = vld [vmem:[%s1886_s8 + $0x98] sm:$0xff]  ;;  %v906_v28 = vld [vmem:[%s1886_s8 + $0x90] sm:$0xff] }
 0x23f   : > { %v1260_v36 = vmul.f32 0.33333334, %v1228_v29 }
 0x240   : > { %v1250_v39 = vmul.f32 0.33333334, %v1218_v31  ;;  %v1249_v40 = vmul.f32 0.33333334, %v1217_v33  ;;  %v1102_v42 = vpop.permute.xlu2 %1101  ;;  %v981_v31 = vld [vmem:[#allocation2 + $0xf8] sm:$0xff] }
 0x241   : > { %v1324_v43 = vadd.f32 %v1292_v30, %v1260_v36  ;;  %v1167_v44 = vmul.f32 %v1102_v42, %v911_v35  ;;  %v1052_v46 = vpop.permute.xlu1 %1051  ;;  %v1047_v48 = vpop.permute.xlu0 %1046  ;;  %v971_v35 = vld [vmem:[#allocation2 + $0xc8] sm:$0xff] }
 0x242   : > { %v1314_v49 = vadd.f32 %v1282_v32, %v1250_v39  ;;  %v1313_v50 = vadd.f32 %v1281_v34, %v1249_v40  ;;  %v1157_v51 = vmul.f32 %v1052_v46, %v901_v37  ;;  %v1156_v52 = vmul.f32 %v1047_v48, %v900_v38  ;;  %v970_v37 = vld [vmem:[#allocation2 + $0x40] sm:$0xff] }
 0x243   : > { %1356 = vst [vmem:[%s1896_s12 + $0xa0] sm:$0xff] %v1324_v43  ;;  %v1199_v53 = vadd.f32 %v1167_v44, %v975_v41 }
 0x244   : > { %1346 = vst [vmem:[%s1896_s12 + $0x50] sm:$0xff] %v1314_v49  ;;  %v1189_v54 = vadd.f32 %v1157_v51, %v965_v45  ;;  %v1188_v55 = vadd.f32 %v1156_v52, %v964_v47  ;;  %v1301_v47 = vmul.f32 0.6666667, %v917_v25  ;;  %v1291_v49 = vmul.f32 0.6666667, %v907_v27 }
 0x245   : > { %1345 = vst [vmem:[%s1896_s12 + $0x48] sm:$0xff] %v1313_v50  ;;  %v1231_v56 = vmul.f32 %v1199_v53, %v1102_v42  ;;  %v1290_v51 = vmul.f32 0.6666667, %v906_v28  ;;  %v910_v53 = vld [vmem:[%s1886_s8 + $0xb0] sm:$0xff] }
 0x246   : > { %v1221_v58 = vmul.f32 %v1189_v54, %v1052_v46  ;;  %v1220_v60 = vmul.f32 %v1188_v55, %v1047_v48  ;;  %v909_v54 = vld [vmem:[%s1886_s8 + $0xa8] sm:$0xff] }
 0x247   : > { %v1263_v63 = vmul.f32 0.33333334, %v1231_v56 }
 0x248   : > { %v1253_v2 = vmul.f32 0.33333334, %v1221_v58  ;;  %v1252_v3 = vmul.f32 0.33333334, %v1220_v60  ;;  %v1117_v5 = vpop.permute.xlu2 %1116  ;;  %v974_v58 = vld [vmem:[#allocation2 + $0x70] sm:$0xff] }
 0x249   : > { %v1327_v6 = vadd.f32 %v1295_v57, %v1263_v63  ;;  %v1170_v7 = vmul.f32 %v1117_v5, %v914_v62  ;;  %v1067_v9 = vpop.permute.xlu1 %1066  ;;  %v1062_v11 = vpop.permute.xlu0 %1061  ;;  %v973_v60 = vld [vmem:[#allocation2 + $0x90] sm:$0xff] }
 0x24a   : > { %v1317_v12 = vadd.f32 %v1285_v59, %v1253_v2  ;;  %v1316_v13 = vadd.f32 %v1284_v61, %v1252_v3  ;;  %v1160_v14 = vmul.f32 %v1067_v9, %v904_v0  ;;  %v1159_v15 = vmul.f32 %v1062_v11, %v903_v1 }
 0x24b   : > { %1359 = vst [vmem:[%s1896_s12 + $0xb8] sm:$0xff] %v1327_v6  ;;  %v1202_v16 = vadd.f32 %v1170_v7, %v978_v4  ;;  %v1293_v7 = vmul.f32 0.6666667, %v909_v54 }
 0x24c   : > { %1349 = vst [vmem:[%s1896_s12 + $0x68] sm:$0xff] %v1317_v12  ;;  %v1192_v17 = vadd.f32 %v1160_v14, %v968_v8  ;;  %v1191_v18 = vadd.f32 %v1159_v15, %v967_v10  ;;  %v913_v8 = vld [vmem:[%s1886_s8 + $0xc8] sm:$0xff]  ;;  %v977_v12 = vld [vmem:[#allocation2 + $0xd0] sm:$0xff] }
 0x24d   : > { %1348 = vst [vmem:[%s1896_s12 + $0x60] sm:$0xff] %v1316_v13  ;;  %v1234_v19 = vmul.f32 %v1202_v16, %v1117_v5  ;;  %v1294_v5 = vmul.f32 0.6666667, %v910_v53  ;;  %v976_v14 = vld [vmem:[#allocation2 + $0xa8] sm:$0xff] }
 0x24e   : > { %v1224_v21 = vmul.f32 %v1192_v17, %v1067_v9  ;;  %v1223_v23 = vmul.f32 %v1191_v18, %v1062_v11  ;;  %v912_v9 = vld [vmem:[%s1886_s8 + $0xc0] sm:$0xff] }
 0x24f   : > { %v1266_v26 = vmul.f32 0.33333334, %v1234_v19 }
 0x250   : > { %v1256_v29 = vmul.f32 0.33333334, %v1224_v21  ;;  %v1255_v30 = vmul.f32 0.33333334, %v1223_v23  ;;  %v1132_v32 = vpop.permute.xlu2 %1131  ;;  %v1297_v23 = vmul.f32 0.6666667, %v913_v8 }
 0x251   : > { %v1330_v33 = vadd.f32 %v1298_v20, %v1266_v26  ;;  %v1173_v34 = vmul.f32 %v1132_v32, %v917_v25  ;;  %v1082_v36 = vpop.permute.xlu1 %1081  ;;  %v1077_v38 = vpop.permute.xlu0 %1076  ;;  %v1296_v25 = vmul.f32 0.6666667, %v912_v9  ;;  %v916_v26 = vld [vmem:[%s1886_s8 + $0xe0] sm:$0xff] }
 0x252   : > { %v1320_v39 = vadd.f32 %v1288_v22, %v1256_v29  ;;  %v1319_v40 = vadd.f32 %v1287_v24, %v1255_v30  ;;  %v1163_v41 = vmul.f32 %v1082_v36, %v907_v27  ;;  %v1162_v42 = vmul.f32 %v1077_v38, %v906_v28  ;;  %v915_v27 = vld [vmem:[%s1886_s8 + $0xd8] sm:$0xff]  ;;  %v980_v30 = vld [vmem:[#allocation2 + $0xa0] sm:$0xff] }
 0x253   : > { %1362 = vst [vmem:[%s1896_s12 + $0xd0] sm:$0xff] %v1330_v33  ;;  %v1205_v43 = vadd.f32 %v1173_v34, %v981_v31 }
 0x254   : > { %1352 = vst [vmem:[%s1896_s12 + $0x80] sm:$0xff] %v1320_v39  ;;  %v1195_v44 = vadd.f32 %v1163_v41, %v971_v35  ;;  %v1194_v45 = vadd.f32 %v1162_v42, %v970_v37  ;;  %v1300_v41 = vmul.f32 0.6666667, %v916_v26 }
 0x255   : > { %1351 = vst [vmem:[%s1896_s12 + $0x78] sm:$0xff] %v1319_v40  ;;  %v1237_v46 = vmul.f32 %v1205_v43, %v1132_v32  ;;  %v979_v32 = vld [vmem:[#allocation2 + $0x28] sm:$0xff]  ;;  %v1299_v43 = vmul.f32 0.6666667, %v915_v27 }
 0x256   : > { %v1227_v48 = vmul.f32 %v1195_v44, %v1082_v36  ;;  %v1226_v50 = vmul.f32 %v1194_v45, %v1077_v38  ;;  %v919_v44 = vld [vmem:[%s1886_s8 + $0xf8] sm:$0xff]  ;;  %v918_v45 = vld [vmem:[%s1886_s8 + $0xf0] sm:$0xff] }
 0x257   : > { %v1269_v52 = vmul.f32 0.33333334, %v1237_v46 }
 0x258   : > { %v1259_v55 = vmul.f32 0.33333334, %v1227_v48  ;;  %v1258_v56 = vmul.f32 0.33333334, %v1226_v50  ;;  %v983_v48 = vld [vmem:[#allocation2 + $0x98] sm:$0xff]  ;;  %v982_v50 = vld [vmem:[#allocation2 + $0x20] sm:$0xff] }
 0x259   : > { %v1333_v57 = vadd.f32 %v1301_v47, %v1269_v52  ;;  %v1097_v59 = vpop.permute.xlu1 %1096  ;;  %v1092_v61 = vpop.permute.xlu0 %1091 }
 0x25a   : > { %v1323_v62 = vadd.f32 %v1291_v49, %v1259_v55  ;;  %v1322_v63 = vadd.f32 %v1290_v51, %v1258_v56  ;;  %v1166_v0 = vmul.f32 %v1097_v59, %v910_v53  ;;  %v1165_v1 = vmul.f32 %v1092_v61, %v909_v54 }
 0x25b   : > { %1365 = vst [vmem:[%s1896_s12 + $0xe8] sm:$0xff] %v1333_v57 }
 0x25c   : > { %1355 = vst [vmem:[%s1896_s12 + $0x98] sm:$0xff] %v1323_v62  ;;  %v1198_v2 = vadd.f32 %v1166_v0, %v974_v58  ;;  %v1197_v3 = vadd.f32 %v1165_v1, %v973_v60 }
 0x25d   : > { %1354 = vst [vmem:[%s1896_s12 + $0x90] sm:$0xff] %v1322_v63 }
 0x25e   : > { %v1230_v4 = vmul.f32 %v1198_v2, %v1097_v59  ;;  %v1229_v6 = vmul.f32 %v1197_v3, %v1092_v61  ;;  %v1303_v59 = vmul.f32 0.6666667, %v919_v44  ;;  %v1302_v61 = vmul.f32 0.6666667, %v918_v45 }
 0x260   : > { %v1262_v10 = vmul.f32 0.33333334, %v1230_v4  ;;  %v1261_v11 = vmul.f32 0.33333334, %v1229_v6 }
 0x261   : > { %v1112_v13 = vpop.permute.xlu1 %1111  ;;  %v1107_v15 = vpop.permute.xlu0 %1106 }
 0x262   : > { %v1326_v16 = vadd.f32 %v1294_v5, %v1262_v10  ;;  %v1325_v17 = vadd.f32 %v1293_v7, %v1261_v11  ;;  %v1169_v18 = vmul.f32 %v1112_v13, %v913_v8  ;;  %v1168_v19 = vmul.f32 %v1107_v15, %v912_v9 }
 0x264   : > { %1358 = vst [vmem:[%s1896_s12 + $0xb0] sm:$0xff] %v1326_v16  ;;  %v1201_v20 = vadd.f32 %v1169_v18, %v977_v12  ;;  %v1200_v21 = vadd.f32 %v1168_v19, %v976_v14 }
 0x265   : > { %1357 = vst [vmem:[%s1896_s12 + $0xa8] sm:$0xff] %v1325_v17 }
 0x266   : > { %v1233_v22 = vmul.f32 %v1201_v20, %v1112_v13  ;;  %v1232_v24 = vmul.f32 %v1200_v21, %v1107_v15 }
 0x268   : > { %v1265_v28 = vmul.f32 0.33333334, %v1233_v22  ;;  %v1264_v29 = vmul.f32 0.33333334, %v1232_v24 }
 0x269   : > { %v1127_v31 = vpop.permute.xlu1 %1126  ;;  %v1122_v33 = vpop.permute.xlu0 %1121 }
 0x26a   : > { %v1329_v34 = vadd.f32 %v1297_v23, %v1265_v28  ;;  %v1328_v35 = vadd.f32 %v1296_v25, %v1264_v29  ;;  %v1172_v36 = vmul.f32 %v1127_v31, %v916_v26  ;;  %v1171_v37 = vmul.f32 %v1122_v33, %v915_v27 }
 0x26c   : > { %1361 = vst [vmem:[%s1896_s12 + $0xc8] sm:$0xff] %v1329_v34  ;;  %v1204_v38 = vadd.f32 %v1172_v36, %v980_v30  ;;  %v1203_v39 = vadd.f32 %v1171_v37, %v979_v32 }
 0x26d   : > { %1360 = vst [vmem:[%s1896_s12 + $0xc0] sm:$0xff] %v1328_v35 }
 0x26e   : > { %v1236_v40 = vmul.f32 %v1204_v38, %v1127_v31  ;;  %v1235_v42 = vmul.f32 %v1203_v39, %v1122_v33 }
 0x270   : > { %v1268_v46 = vmul.f32 0.33333334, %v1236_v40  ;;  %v1267_v47 = vmul.f32 0.33333334, %v1235_v42 }
 0x271   : > { %v1142_v49 = vpop.permute.xlu1 %1141  ;;  %v1137_v51 = vpop.permute.xlu0 %1136 }
 0x272   : > { %v1332_v52 = vadd.f32 %v1300_v41, %v1268_v46  ;;  %v1331_v53 = vadd.f32 %v1299_v43, %v1267_v47  ;;  %v1175_v54 = vmul.f32 %v1142_v49, %v919_v44  ;;  %v1174_v55 = vmul.f32 %v1137_v51, %v918_v45 }
 0x274   : > { %1364 = vst [vmem:[%s1896_s12 + $0xe0] sm:$0xff] %v1332_v52  ;;  %v1207_v56 = vadd.f32 %v1175_v54, %v983_v48  ;;  %v1206_v57 = vadd.f32 %v1174_v55, %v982_v50 }
 0x275   : > { %1363 = vst [vmem:[%s1896_s12 + $0xd8] sm:$0xff] %v1331_v53 }
 0x276   : > { %v1239_v58 = vmul.f32 %v1207_v56, %v1142_v49  ;;  %v1238_v60 = vmul.f32 %v1206_v57, %v1137_v51 }
 0x278   : > { %v1271_v62 = vmul.f32 0.33333334, %v1239_v58  ;;  %v1270_v63 = vmul.f32 0.33333334, %v1238_v60 }
 0x27a   : > { %v1335_v0 = vadd.f32 %v1303_v59, %v1271_v62  ;;  %v1334_v1 = vadd.f32 %v1302_v61, %v1270_v63 }
 0x27c   : > { %1367 = vst [vmem:[%s1896_s12 + $0xf8] sm:$0xff] %v1335_v0 }
 0x27d   : > { %1366 = vst [vmem:[%s1896_s12 + $0xf0] sm:$0xff] %v1334_v1 }
 0x27e PF: > { %s14_s21 = sadd.s32 1, %s1652_s21   ;;  %s2120_s15 = smov %s1632_s16 }
 0x27f   : > { %p11_p0 = scmp.ge.s32.totalorder %s14_s21, 6   ;;  %s2121_s16 = smov %s1732_s28 }
 0x280   : > { %s2122_s17 = smov %s1644_s19  ;;  %s2123_s18 = smov %s1648_s20 }
 0x281   : > { %s2124_s19 = smov %s2127_s22  ;;  %s2125_s20 = smov %s2131_s23 }
 0x282   :  { %13 = sbr.rel (!%p11_p0) target bundleno = 4 (0x4), region = 111 }

</bundles_post_ra>
